<compile_context>
chip_gen: v7x
topology: tpu7x:2x2x1
jax: 0.10.0
libtpu: 0.0.40
codegen_flags: <defaults>
</compile_context>

<pallas_src>
import functools
import math

import jax
import jax.numpy as jnp
from jax import lax
from jax.experimental import pallas as pl
from jax.experimental.pallas import tpu as pltpu

MASK_VALUE = -1e30  # large-finite mask (avoids inf-inf paths in the online softmax)


def _round_up(x, m):
    return (x + m - 1) // m * m


def _pick_tile(dim, max_tile, base=128):
    """Largest multiple of `base` <= max_tile that divides round_up(dim, base)."""
    dim_r = _round_up(dim, base)
    t = min(_round_up(max_tile, base), dim_r)
    while dim_r % t:
        t -= base
    return t


# ----------------------------------------------------------------------------
# Tiled linear:  (M, K) @ (K, N) + (1, N)
# ----------------------------------------------------------------------------
def _linear_kernel(x_ref, w_ref, b_ref, o_ref, acc_ref):
    k = pl.program_id(2)

    @pl.when(k == 0)
    def _init():
        acc_ref[...] = jnp.zeros(acc_ref.shape, acc_ref.dtype)

    acc_ref[...] += jnp.dot(x_ref[...], w_ref[...],
                            preferred_element_type=jnp.float32)

    @pl.when(k == pl.num_programs(2) - 1)
    def _finalize():
        o_ref[...] = (acc_ref[...] + b_ref[...].astype(jnp.float32)).astype(o_ref.dtype)


def pallas_linear(x2d, w, b, *, tm=512, tn=512, tk=512):
    """x2d: (M, K), w: (K, N), b: (N,) -> (M, N). Tiled + K-accumulated."""
    M, K = x2d.shape
    Kw, N = w.shape
    assert K == Kw
    tm = _pick_tile(M, tm)
    tn = _pick_tile(N, tn)
    tk = _pick_tile(K, tk)
    Mp, Np, Kp = _round_up(M, tm), _round_up(N, tn), _round_up(K, tk)

    if (Mp, Kp) != (M, K):
        x2d = jnp.pad(x2d, ((0, Mp - M), (0, Kp - K)))
    if (Kp, Np) != (K, N):
        w = jnp.pad(w, ((0, Kp - K), (0, Np - N)))
    b2d = b.reshape(1, N)
    if Np != N:
        b2d = jnp.pad(b2d, ((0, 0), (0, Np - N)))

    out = pl.pallas_call(
        _linear_kernel,
        out_shape=jax.ShapeDtypeStruct((Mp, Np), x2d.dtype),
        grid=(Mp // tm, Np // tn, Kp // tk),
        in_specs=[
            pl.BlockSpec((tm, tk), lambda i, j, k: (i, k)),
            pl.BlockSpec((tk, tn), lambda i, j, k: (k, j)),
            pl.BlockSpec((1, tn), lambda i, j, k: (0, j)),
        ],
        out_specs=pl.BlockSpec((tm, tn), lambda i, j, k: (i, j)),
        scratch_shapes=[pltpu.VMEM((tm, tn), jnp.float32)],
        compiler_params=pltpu.CompilerParams(
            dimension_semantics=("parallel", "parallel", "arbitrary")),
    )(x2d, w, b2d)

    if (Mp, Np) != (M, N):
        out = out[:M, :N]
    return out


# ----------------------------------------------------------------------------
# Flash-style causal attention over the fused (B, T, 3C) qkv activation
# (q is expected to already carry the 1/sqrt(head_dim) scale)
# ----------------------------------------------------------------------------
def _flash_attn_kernel(qi_tab_ref, kvi_tab_ref, q_ref, k_ref, v_ref, o_ref,
                       m_ref, l_ref, acc_ref, *, n_head, head_dim, block_q, block_kv):
    step = pl.program_id(1)
    qi = qi_tab_ref[step]
    kvi = kvi_tab_ref[step]

    @pl.when(kvi == 0)
    def _init():
        m_ref[...] = jnp.full(m_ref.shape, MASK_VALUE, dtype=m_ref.dtype)
        l_ref[...] = jnp.zeros(l_ref.shape, l_ref.dtype)
        acc_ref[...] = jnp.zeros(acc_ref.shape, acc_ref.dtype)

    def _process(apply_mask):
        if apply_mask:
            # Diagonal tile: qi == kvi and block_q == block_kv, so the causal
            # condition collapses to a static intra-tile row >= col mask.
            causal = (lax.broadcasted_iota(jnp.int32, (block_q, block_kv), 0)
                      >= lax.broadcasted_iota(jnp.int32, (block_q, block_kv), 1))
        for h in range(n_head):  # static unroll over heads (lane slices of the C axis)
            lo, hi = h * head_dim, (h + 1) * head_dim
            q = q_ref[:, lo:hi]            # pre-scaled; stays in storage dtype for the MXU
            k = k_ref[:, lo:hi]
            v = v_ref[:, lo:hi]
            s = lax.dot_general(q, k, (((1,), (1,)), ((), ())),   # q @ k^T w/o explicit .T
                                preferred_element_type=jnp.float32)
            if apply_mask:
                s = jnp.where(causal, s, MASK_VALUE)
            m_prev = m_ref[:, h:h + 1]     # (block_q, 1) f32
            l_prev = l_ref[:, h:h + 1]
            m_new = jnp.maximum(m_prev, jnp.max(s, axis=-1, keepdims=True))
            alpha = jnp.exp(m_prev - m_new)
            p = jnp.exp(s - m_new)
            l_ref[:, h:h + 1] = alpha * l_prev + jnp.sum(p, axis=-1, keepdims=True)
            acc_ref[:, lo:hi] = alpha * acc_ref[:, lo:hi] + jnp.dot(
                p.astype(v.dtype), v, preferred_element_type=jnp.float32)
            m_ref[:, h:h + 1] = m_new

    @pl.when(kvi < qi)        # strictly below the diagonal: no mask needed
    def _off_diag():
        _process(apply_mask=False)

    @pl.when(kvi == qi)       # diagonal tile: mask + finalize (last step of this q row)
    def _diag_and_finalize():
        _process(apply_mask=True)
        # Exact reciprocal for f32 outputs; EUP approx for bf16/fp16 outputs.
        use_approx = jnp.dtype(o_ref.dtype) != jnp.dtype(jnp.float32)
        for h in range(n_head):
            lo, hi = h * head_dim, (h + 1) * head_dim
            inv_l = pl.reciprocal(l_ref[:, h:h + 1], approx=use_approx)
            o_ref[:, lo:hi] = (acc_ref[:, lo:hi] * inv_l).astype(o_ref.dtype)


def _attn_vmem_bytes(block, C, itemsize):
    # q/k/v/out slabs double-buffered + f32 accumulator (m/l scratches negligible).
    return block * C * (8 * itemsize + 4)


def pallas_causal_attention(qkv, n_head, *, block=256):
    """qkv: (B, T, 3C) laid out [q | k | v]; q pre-scaled by 1/sqrt(hd) -> y: (B, T, C)."""
    B, T, threeC = qkv.shape
    C = threeC // 3
    head_dim = C // n_head
    itemsize = jnp.dtype(qkv.dtype).itemsize

    # VMEM-aware block choice: 256 fills the 256x256 MXUs of v6e/v7x; fall back to
    # 128 when the per-step working set would blow through v7x's smaller VMEM.
    if block > 128 and _attn_vmem_bytes(block, C, itemsize) > 24 * 1024 * 1024:
        block = 128

    if T <= block:
        block_q = T          # single tile == full dim (always a legal block shape)
        Tp = T
    else:
        block_q = block      # multiple of 128
        Tp = _round_up(T, block_q)
    block_kv = block_q
    nq = Tp // block_q

    if Tp != T:
        # Zero-pad the sequence; pad kv rows sit above the causal diagonal for every
        # real query, so they are masked/skipped and never influence real outputs.
        qkv = jnp.pad(qkv, ((0, 0), (0, Tp - T), (0, 0)))

    # Triangular (qi, kvi) schedule: only tiles on/below the causal diagonal are
    # visited -> no DMA and no grid-step overhead for fully-masked tiles.
    qi_list, kvi_list = [], []
    for qi in range(nq):
        for kvi in range(qi + 1):
            qi_list.append(qi)
            kvi_list.append(kvi)
    qi_tab = jnp.asarray(qi_list, dtype=jnp.int32)
    kvi_tab = jnp.asarray(kvi_list, dtype=jnp.int32)
    n_steps = len(qi_list)

    kernel = functools.partial(_flash_attn_kernel, n_head=n_head, head_dim=head_dim,
                               block_q=block_q, block_kv=block_kv)

    cp_kwargs = dict(dimension_semantics=("parallel", "arbitrary"))
    est = _attn_vmem_bytes(block_q, C, itemsize)
    if est > 28 * 1024 * 1024:   # above default scoped limit -> raise with headroom
        cp_kwargs["vmem_limit_bytes"] = min(int(est * 1.5), 100 * 1024 * 1024)

    out = pl.pallas_call(
        kernel,
        out_shape=jax.ShapeDtypeStruct((B, Tp, C), qkv.dtype),
        grid_spec=pltpu.PrefetchScalarGridSpec(
            num_scalar_prefetch=2,
            grid=(B, n_steps),
            in_specs=[
                pl.BlockSpec((None, block_q, C),
                             lambda b, s, qi_t, kvi_t: (b, qi_t[s], 0)),   # q slab
                pl.BlockSpec((None, block_kv, C),
                             lambda b, s, qi_t, kvi_t: (b, kvi_t[s], 1)),  # k slab
                pl.BlockSpec((None, block_kv, C),
                             lambda b, s, qi_t, kvi_t: (b, kvi_t[s], 2)),  # v slab
            ],
            out_specs=pl.BlockSpec((None, block_q, C),
                                   lambda b, s, qi_t, kvi_t: (b, qi_t[s], 0)),
            scratch_shapes=[
                pltpu.VMEM((block_q, n_head), jnp.float32),   # running max (lane-packed)
                pltpu.VMEM((block_q, n_head), jnp.float32),   # running sum
                pltpu.VMEM((block_q, C), jnp.float32),        # output accumulator
            ]),
        compiler_params=pltpu.CompilerParams(**cp_kwargs),
    )(qi_tab, kvi_tab, qkv, qkv, qkv)

    if Tp != T:
        out = out[:, :T, :]
    return out


# ----------------------------------------------------------------------------
# Module wrapper (forward of CausalSelfAttention)
# ----------------------------------------------------------------------------
def causal_self_attention(x, params, n_head, *, attn_block=256):
    """x: (B, T, C).  Weights stored as (in, out) = W.T of the nn.Linear weight."""
    B, T, C = x.shape
    head_dim = C // n_head
    sm_scale = 1.0 / math.sqrt(head_dim)

    # Fold the softmax scale into the q columns of c_attn once (constant fold),
    # so the attention kernel never rescales the q tile per kv step.
    dt = params["w_attn"].dtype
    scale_vec = jnp.concatenate([
        jnp.full((C,), sm_scale, dtype=jnp.float32),
        jnp.ones((2 * C,), dtype=jnp.float32)])
    w_attn = (params["w_attn"].astype(jnp.float32) * scale_vec[None, :]).astype(dt)
    b_attn = (params["b_attn"].astype(jnp.float32) * scale_vec).astype(params["b_attn"].dtype)

    qkv = pallas_linear(x.reshape(B * T, C), w_attn, b_attn)
    y = pallas_causal_attention(qkv.reshape(B, T, 3 * C), n_head, block=attn_block)
    out = pallas_linear(y.reshape(B * T, C), params["w_proj"], params["b_proj"])
    return out.reshape(B, T, C)

# TODO(synk): c_proj could be fused into the attention finalize when C*C*dtype fits
# VMEM (skips one (B,T,C) HBM round trip); kept separate here for generality.


# ----------------------------------------------------------------------------
# Pure-JAX f32 reference
# ----------------------------------------------------------------------------
def reference(x, params, n_head):
    x = x.astype(jnp.float32)
    w_attn = params["w_attn"].astype(jnp.float32)
    b_attn = params["b_attn"].astype(jnp.float32)
    w_proj = params["w_proj"].astype(jnp.float32)
    b_proj = params["b_proj"].astype(jnp.float32)
    B, T, C = x.shape
    hd = C // n_head
    qkv = x @ w_attn + b_attn
    q, k, v = jnp.split(qkv, 3, axis=2)
    q = q.reshape(B, T, n_head, hd).transpose(0, 2, 1, 3)
    k = k.reshape(B, T, n_head, hd).transpose(0, 2, 1, 3)
    v = v.reshape(B, T, n_head, hd).transpose(0, 2, 1, 3)
    s = jnp.einsum("bhqd,bhkd->bhqk", q, k) / math.sqrt(hd)
    mask = jnp.tril(jnp.ones((T, T), dtype=bool))
    s = jnp.where(mask[None, None], s, -jnp.inf)
    p = jax.nn.softmax(s, axis=-1)
    y = jnp.einsum("bhqk,bhkd->bhqd", p, v)
    y = y.transpose(0, 2, 1, 3).reshape(B, T, C)
    return y @ w_proj + b_proj


if __name__ == "__main__":
    # Small config, but large enough to exercise the machinery: head_dim = 128
    # (lane-dense head slices), 2 q-tiles at block=256 -> triangular grid of 3 steps.
    B, T, C, n_head = 2, 512, 256, 2

    key = jax.random.PRNGKey(0)
    kx, k1, k2, k3, k4 = jax.random.split(key, 5)
    x = jax.random.normal(kx, (B, T, C), dtype=jnp.float32)
    params = {
        "w_attn": 0.02 * jax.random.normal(k1, (C, 3 * C), dtype=jnp.float32),
        "b_attn": 0.02 * jax.random.normal(k2, (3 * C,), dtype=jnp.float32),
        "w_proj": 0.02 * jax.random.normal(k3, (C, C), dtype=jnp.float32),
        "b_proj": 0.02 * jax.random.normal(k4, (C,), dtype=jnp.float32),
    }

    # f32 path (exact reciprocal for f32 outputs).
    out_f32 = jax.block_until_ready(causal_self_attention(x, params, n_head))
    ref_f32 = reference(x, params, n_head)
    assert out_f32.shape == (B, T, C)
    assert jnp.allclose(out_f32, ref_f32, atol=3e-3, rtol=3e-3), (
        f"f32 mismatch, max abs err = {jnp.max(jnp.abs(out_f32 - ref_f32))}")

    # bf16 path: bf16 operands on the MXU with f32 accumulation (the perf configuration).
    x_bf = x.astype(jnp.bfloat16)
    params_bf = {k: v.astype(jnp.bfloat16) for k, v in params.items()}
    out_bf = jax.block_until_ready(causal_self_attention(x_bf, params_bf, n_head))
    ref_bf = reference(x_bf, params_bf, n_head)  # f32 math on the same bf16 inputs
    diff = out_bf.astype(jnp.float32)
    assert jnp.allclose(diff, ref_bf, atol=5e-2, rtol=5e-2), (
        f"bf16 mismatch, max abs err = {jnp.max(jnp.abs(diff - ref_bf))}")

    # Non-multiple sequence length: exercises the T-padding path (T=192, block=128 -> pad 256).
    Bp, Tp_test = 1, 192
    x_pad = jax.random.normal(jax.random.PRNGKey(1), (Bp, Tp_test, C), dtype=jnp.float32)
    out_pad = jax.block_until_ready(
        causal_self_attention(x_pad, params, n_head, attn_block=128))
    ref_pad = reference(x_pad, params, n_head)
    assert jnp.allclose(out_pad, ref_pad, atol=3e-3, rtol=3e-3), (
        f"padded-T mismatch, max abs err = {jnp.max(jnp.abs(out_pad - ref_pad))}")

    print("KERNEL_OK")
</pallas_src>

<mosaic_0001>
module attributes {stable_mosaic.version = 11 : i64} {
  func.func @_linear_kernel(%arg0: i32, %arg1: i32, %arg2: i32, %arg3: memref<512x256xf32, #tpu.memory_space<vmem>>, %arg4: memref<256x384xf32, #tpu.memory_space<vmem>>, %arg5: memref<1x384xf32, #tpu.memory_space<vmem>>, %arg6: memref<512x384xf32, #tpu.memory_space<vmem>>, %arg7: memref<512x384xf32, #tpu.memory_space<vmem>>) attributes {dimension_semantics = [#tpu.dimension_semantics<parallel>, #tpu.dimension_semantics<parallel>, #tpu.dimension_semantics<arbitrary>], iteration_bounds = array<i64: 2, 2, 1>, scalar_prefetch = 0 : i64, scratch_operands = 1 : i64, tpu.core_type = #tpu.core_type<tc>, window_params = [{transform_indices = @transform_0, window_bounds = array<i64: 512, 256>}, {transform_indices = @transform_1, window_bounds = array<i64: 256, 384>}, {transform_indices = @transform_2, window_bounds = array<i64: 1, 384>}, {transform_indices = @transform_3, window_bounds = array<i64: 512, 384>}]} {
    %c0_i32 = arith.constant 0 : i32
    %0 = arith.cmpi eq, %arg2, %c0_i32 : i32
    %1 = arith.extui %0 : i1 to i32
    %c0_i32_0 = arith.constant 0 : i32
    %2 = arith.cmpi ne, %1, %c0_i32_0 : i32
    scf.if %2 {
      %cst_10 = arith.constant 0.000000e+00 : f32
      %12 = vector.broadcast %cst_10 : f32 to vector<512x384xf32>
      %c0_11 = arith.constant 0 : index
      %c0_12 = arith.constant 0 : index
      %13 = vector.load %arg7[%c0_11, %c0_12] : memref<512x384xf32, #tpu.memory_space<vmem>>, vector<512x384xf32>
      tpu.vector_store %arg7[%c0_11, %c0_12], %12 {strides = array<i32>} : memref<512x384xf32, #tpu.memory_space<vmem>>, vector<512x384xf32>,
    } else {
    }
    %c0 = arith.constant 0 : index
    %c0_1 = arith.constant 0 : index
    %3 = vector.load %arg7[%c0, %c0_1] : memref<512x384xf32, #tpu.memory_space<vmem>>, vector<512x384xf32>
    %c0_2 = arith.constant 0 : index
    %c0_3 = arith.constant 0 : index
    %4 = vector.load %arg3[%c0_2, %c0_3] : memref<512x256xf32, #tpu.memory_space<vmem>>, vector<512x256xf32>
    %c0_4 = arith.constant 0 : index
    %c0_5 = arith.constant 0 : index
    %5 = vector.load %arg4[%c0_4, %c0_5] : memref<256x384xf32, #tpu.memory_space<vmem>>, vector<256x384xf32>
    %cst = arith.constant dense<0.000000e+00> : vector<512x384xf32>
    %6 = tpu.matmul %4, %5, %cst {dimension_numbers = #tpu.dot_dimension_numbers<[1], [0], [0], [1], [0, 0, 1, 1], [], []>} : vector<512x256xf32>, vector<256x384xf32>, vector<512x384xf32> -> vector<512x384xf32>
    %7 = arith.addf %3, %6 : vector<512x384xf32>
    %c0_6 = arith.constant 0 : index
    %c0_7 = arith.constant 0 : index
    %8 = vector.load %arg7[%c0_6, %c0_7] : memref<512x384xf32, #tpu.memory_space<vmem>>, vector<512x384xf32>
    tpu.vector_store %arg7[%c0_6, %c0_7], %7 {strides = array<i32>} : memref<512x384xf32, #tpu.memory_space<vmem>>, vector<512x384xf32>,
    %c0_i32_8 = arith.constant 0 : i32
    %9 = arith.cmpi eq, %arg2, %c0_i32_8 : i32
    %10 = arith.extui %9 : i1 to i32
    %c0_i32_9 = arith.constant 0 : i32
    %11 = arith.cmpi ne, %10, %c0_i32_9 : i32
    scf.if %11 {
      %c0_10 = arith.constant 0 : index
      %c0_11 = arith.constant 0 : index
      %12 = vector.load %arg7[%c0_10, %c0_11] : memref<512x384xf32, #tpu.memory_space<vmem>>, vector<512x384xf32>
      %c0_12 = arith.constant 0 : index
      %c0_13 = arith.constant 0 : index
      %13 = vector.load %arg5[%c0_12, %c0_13] : memref<1x384xf32, #tpu.memory_space<vmem>>, vector<1x384xf32>
      %14 = vector.broadcast %13 : vector<1x384xf32> to vector<512x384xf32>
      %15 = arith.addf %12, %14 : vector<512x384xf32>
      %c0_14 = arith.constant 0 : index
      %c0_15 = arith.constant 0 : index
      %16 = vector.load %arg6[%c0_14, %c0_15] : memref<512x384xf32, #tpu.memory_space<vmem>>, vector<512x384xf32>
      tpu.vector_store %arg6[%c0_14, %c0_15], %15 {strides = array<i32>} : memref<512x384xf32, #tpu.memory_space<vmem>>, vector<512x384xf32>,
    } else {
    }
    return
  }
  func.func @transform_0(%arg0: i32, %arg1: i32, %arg2: i32) -> (i32, i32) {
    %c0_i32 = arith.constant 0 : i32
    return %arg0, %arg2 : i32, i32
  }
  func.func @transform_1(%arg0: i32, %arg1: i32, %arg2: i32) -> (i32, i32) {
    %c0_i32 = arith.constant 0 : i32
    return %arg2, %arg1 : i32, i32
  }
  func.func @transform_2(%arg0: i32, %arg1: i32, %arg2: i32) -> (i32, i32) {
    %c0_i32 = arith.constant 0 : i32
    %c0_i32_0 = arith.constant 0 : i32
    return %c0_i32, %arg1 : i32, i32
  }
  func.func @transform_3(%arg0: i32, %arg1: i32, %arg2: i32) -> (i32, i32) {
    %c0_i32 = arith.constant 0 : i32
    return %arg0, %arg1 : i32, i32
  }
}

</mosaic_0001>

<bundles_post_ra>
// kernel: tpu_custom_call.1
= control target key start
LH: loop header
LB: loop body
LE: loop exit
PB: predicated region body
PF: predicated region fallthrough
CT: control target
= control target key end

     0   :  { %s4463_s0 = inlined_call_operand.hbm [shape: f32[1024,256], index: 0, kind: input, shape index: {}]   ;;  %s4464_s1 = inlined_call_operand.hbm [shape: f32[256,768], index: 1, kind: input, shape index: {}]   ;;  %s4465_s2 = inlined_call_operand.hbm [shape: f32[1,768], index: 2, kind: input, shape index: {}]   ;;  %s4466_s3 = inlined_call_operand.hbm [shape: f32[1024,768], index: 3, kind: output, shape index: {}]  }
   0x1   :  { %4479 = sst [smem:[#allocation23_spill]] %s4464_s1 }
   0x2   :  { %4480 = sst [smem:[#allocation24_spill]] %s4466_s3 }
   0x3   :  { %8 = vsyncpa [#allocation4], 0 }
   0x4   :  { %10 = vsyncpa [#allocation4 + $0x1], 0 }
   0x5   :  { %11 = vsyncpa [#allocation7], 0 }
   0x6   :  { %13 = vsyncpa [#allocation7 + $0x1], 0 }
   0x7   :  { %14 = vsyncpa [#allocation5], 0 }
   0x8   :  { %16 = vsyncpa [#allocation5 + $0x1], 0  ;;  %s3443_s12 = smov 0   ;;  %s3445_s13 = smov 0  }
   0x9   :  { %s3447_s14 = smov 0   ;;  %s3449_s15 = smov 0  }
   0xa   :  { %s3451_s16 = smov 0   ;;  %s3453_s17 = smov 0  }
   0xb   :  { %s3455_s18 = smov 0   ;;  %s3457_s19 = smov 0  }
   0xc   :  { %s3459_s20 = smov 0   ;;  %s3461_s21 = smov 0  }
   0xd   :  { %s3463_s22 = smov 0   ;;  %s3465_s23 = smov 0  }
   0xe   :  { %s3467_s24 = smov 0   ;;  %s3469_s25 = smov 0  }
   0xf LB: > { %4481 = sst [smem:[#allocation13_spill]] %s3376_s17  ;;  %p58_p0 = scmp.eq.s32.totalorder %s3408_s25, 0  ;;  %s3408_s25 = sphi %s3469_s25, %s22_s25   ;;  %s3404_s24 = sphi %s3467_s24, %s4524_s24   ;;  %s3400_s23 = sphi %s3465_s23, %s4535_s23   ;;  %s3396_s22 = sphi %s3463_s22, %s4522_s22   ;;  %s3392_s21 = sphi %s3461_s21, %s4534_s21   ;;  %s3388_s20 = sphi %s3459_s20, %s4521_s20   ;;  %s3384_s19 = sphi %s3457_s19, %s4533_s19   ;;  %s3380_s18 = sphi %s3455_s18, %s4532_s18   ;;  %s3376_s17 = sphi %s3453_s17, %s4531_s17   ;;  %s3372_s16 = sphi %s3451_s16, %s4530_s16   ;;  %s3368_s15 = sphi %s3449_s15, %s4529_s15   ;;  %s3364_s14 = sphi %s3447_s14, %s4528_s14   ;;  %s3360_s13 = sphi %s3445_s13, %s4527_s13   ;;  %s3356_s12 = sphi %s3443_s12, %s4526_s12  }
  0x10   : > { %4482 = sst [smem:[#allocation14_spill]] %s3388_s20  ;;  %p85_p1 = scmp.ne.s32.totalorder %s3376_s17, %s3372_s16 }
  0x11   : > { %4483 = sst [smem:[#allocation15_spill]] %s3392_s21  ;;  %p4468_p4 = scmp.lt.s32.totalorder %s3408_s25, 4 }
  0x12   : > { %4484 = sst [smem:[#allocation16_spill]] %s3396_s22  ;;  %p87_p3 = por %p85_p1, %p58_p0 }
  0x13   : > { %4485 = sst [smem:[#allocation17_spill]] %s3404_s24  ;;  %s193_s28 = sand.u32 1, %s3408_s25  }
  0x14   : > { %s4467_s29 = sand.u32 1, %s3376_s17   ;;  %s2903_s4 = smul.u32 384, %s3400_s23 }
  0x15   : > { %s3017_s30 = smul.u32 768, %s4467_s29  ;;  %p3530_p5 = pnand %p4468_p4, %p87_p3 }
  0x16   : > { %s4487_s1 = sld [smem:[#allocation23_spill]]  ;;  %s3541_s11 = scalar_lea.sflag [#allocation7], %s193_s28 }
  0x17   : > { %s197_s9 = scalar_lea.vmem [#allocation6], %s3017_s30  ;;  %p4475_p7 = pneg %p3530_p5 }
  0x18   : > { %s207_s10 = sshll.u32 %s197_s9, 4  ;;  %s3539_s10 = int_to_ptr.vmem [resolvable:$true] %s207_s10 }
  0x1c   : > { %s3537_s8 = scalar_lea.hbm %s4487_s1, %s2903_s4  ;;  %s3173_s7 = scalar_lea.hbm %s4487_s1, 24576 }
  0x1d   : > { %s3168_s29 = scalar_lea.hbm %s3537_s8, 12288  ;;  %p3174_p10 = scmp.lt.u32.totalorder %s3537_s8, %s4487_s1 }
  0x1e   : > { %p3169_p6 = scmp.ne.s32.totalorder %s3537_s8, %s3168_s29  ;;  %p3175_p11 = scmp.lt.u32.totalorder %s3173_s7, %s3168_s29 }
  0x1f   : > { %p3177_p13 = scmp.lt.u32.totalorder %s3168_s29, %s3537_s8 }
  0x20   : > { %p3171_p8 = pnand %p4475_p7, %p3169_p6  ;;  %p3176_p12 = por %p3175_p11, %p3174_p10 }
  0x22   : > { %p3172_p9 = pneg %p3171_p8  ;;  %p3178_p1 = por %p3177_p13, %p3176_p12 }
  0x24   : > { %p3179_p3 = pnand %p3178_p1, %p3172_p9 }
  0x26   : > { %3182 = shalt.err (!%p3179_p3)
}
  0x27   : > { %s3183_s28 = scalar_lea.vmem %s3539_s10, 12288  ;;  %s3410_s30 = smov [#allocation6]  }
  0x28   : > { %p3184_p6 = scmp.ne.s32.totalorder %s3539_s10, %s3183_s28  ;;  %s3188_s9 = sshll.u32 %s3410_s30, 4  ;;  %s3189_s9 = int_to_ptr.vmem [resolvable:$false] %s3188_s9 }
  0x29   : > { %s3190_s26 = scalar_lea.vmem %s3189_s9, 24576  ;;  %p3191_p2 = scmp.lt.s32.totalorder %s3539_s10, %s3189_s9 }
  0x2a   : > { %p3186_p8 = pnand %p3184_p6, %p4475_p7  ;;  %p3192_p10 = scmp.lt.s32.totalorder %s3190_s26, %s3183_s28 }
  0x2c   : > { %p3187_p4 = pneg %p3186_p8  ;;  %p3193_p11 = por %p3192_p10, %p3191_p2 }
  0x2e   : > { %p3194_p12 = pnand %p3193_p11, %p3187_p4 }
  0x30   : > { %3197 = shalt.err (!%p3194_p12)
}
  0x31   : > { %s3411_s27 = smov 768   ;;  %s3412_s29 = smov 384  }
  0x32   : > { %s3413_s4 = smov 24   ;;  %p2894_p2 = scmp.ge.s32.totalorder %s3408_s25, 1 }
  0x33   : > { %3037 = dma.hbm_to_vmem [thread:$0]  (!%p3530_p5), %s3537_s8, 12288, %s3539_s10, %s3541_s11, %s3411_s27, %s3412_s29, %s3413_s4  }
  0x34   : > { %p234_p4 = scmp.lt.s32.totalorder %s3408_s25, 5  ;;  %s3576_s7 = sadd.s32 4294967295, %s3408_s25  }
  0x35   : > { %s2885_s28 = sadd.s32 4294967294, %s3408_s25   ;;  %s4489_s30 = sadd.s32 1, %s3400_s23 }
  0x36   : > { %p3571_p9 = pnand %p2894_p2, %p234_p4  ;;  %p39_p13 = scmp.ge.s32.totalorder %s4489_s30, 2 }
  0x37   : > { %s41_s9 = sadd.s32 1, %s3404_s24  ;;  %s50_s26 = sadd.s32 1, %s3388_s20 }
  0x38   : > { %s4488_s6 = scalar_select %p3571_p9, 1, 0 }
  0x39   : > { %s4490_s1 = smov %s4489_s30  ;;  %s4539_s9 = smov (!%p39_p13, %s41_s9), %s3404_s24 }
  0x3a   : > { %s4537_s1 = smov (%p39_p13, %s4490_s1), 0  ;;  %p57_p1 = scmp.ne.s32.totalorder %s3388_s20, %s3384_s19 }
  0x3b   : > { %4491 = sst [smem:[#allocation18_spill]] %s4537_s1  ;;  %p63_p3 = scmp.ne.s32.totalorder %s3384_s19, %s3380_s18 }
  0x3c   : > { %p43_p6 = scmp.ge.s32.totalorder %s4539_s9, 2  ;;  %p64_p8 = scmp.eq.s32.totalorder %s3576_s7, 0 }
  0x3d   : > { %p3595_p10 = por %p58_p0, %p57_p1  ;;  %s74_s10 = ssub.s32 %s3400_s23, %s4537_s1 }
  0x3e   : > { %s4541_s9 = smov (%p43_p6, %s4539_s9), 0  ;;  %p3603_p11 = por %p64_p8, %p63_p3 }
  0x3f   : > { %4493 = sst [smem:[#allocation19_spill]] %s4541_s9  ;;  %p76_p12 = scmp.eq.s32.totalorder %s74_s10, 0 }
  0x40   : > { %s4494_s27 = scalar_select %p3603_p11, 1, 0 }
  0x41   : > { %s45_s18 = ssub.s32 %s3404_s24, %s4541_s9  ;;  %p4495_p2 = scmp.ne.s32.totalorder %s3372_s16, %s3368_s15 }
  0x42   : > { %p48_p0 = scmp.eq.s32.totalorder %s45_s18, 0  ;;  %s129_s4 = sor.u32 %s74_s10, %s45_s18 }
  0x43   : > { %p3612_p4 = por %p4495_p2, %p64_p8  ;;  %s4497_s30 = sadd.s32 1, %s3376_s17 }
  0x44   : > { %s3619_s1 = scalar_select %p76_p12, %s3376_s17, %s4497_s30  }
  0x45   : > { %s4496_s29 = scalar_select %p3612_p4, 1, 0 }
  0x46   : > { %4498 = sst [smem:[#allocation20_spill]] %s3619_s1  ;;  %p130_p13 = scmp.eq.s32.totalorder %s129_s4, 0 }
  0x47   : > { %s3622_s3 = scalar_select %p48_p0, %s3388_s20, %s50_s26  }
  0x48   : > { %s132_s22 = sadd.s32 1, %s3364_s14  ;;  %p142_p1 = scmp.ne.s32.totalorder %s3364_s14, %s3360_s13 }
  0x49   : > { %4499 = sst [smem:[#allocation21_spill]] %s3622_s3  ;;  %p143_p3 = scmp.eq.s32.totalorder %s3576_s7, 3 }
  0x4a   : > { %s3629_s15 = scalar_select %p130_p13, %s3364_s14, %s132_s22  }
  0x4b   : > { %p3631_p6 = por %p143_p3, %p142_p1  ;;  %p148_p8 = scmp.ne.s32.totalorder %s3360_s13, %s3356_s12 }
  0x4c   : > { %4500 = sst [smem:[#allocation22_spill]] %s3629_s15  ;;  %p149_p2 = scmp.eq.s32.totalorder %s2885_s28, 3 }
  0x4d   : > { %s4501_s9 = scalar_select %p3631_p6, 1, 0 }
  0x4e   : > { %s169_s10 = sand.u32 1, %s3388_s20   ;;  %p3638_p12 = por %p149_p2, %p148_p8 }
  0x4f   : > { %s2888_s18 = sshll.u32 %s169_s10, 10  ;;  %s2902_s4 = sshll.u32 %s3404_s24, 14 }
  0x50   : > { %s4502_s26 = scalar_select %p3638_p12, 1, 0 }
  0x51   : > { %s173_s30 = scalar_lea.vmem [#allocation3], %s2888_s18  ;;  %s3646_s22 = scalar_lea.hbm %s4463_s0, %s2902_s4 }
  0x52   : > { %s183_s3 = sshll.u32 %s173_s30, 4  ;;  %p4503_p0 = scmp.lt.s32.totalorder %s3408_s25, 4  ;;  %s3648_s3 = int_to_ptr.vmem [resolvable:$true] %s183_s3 }
  0x53   : > { %s4505_s24 = sand.u32 1, %s3376_s17   ;;  %s2904_s1 = smul.u32 48, %s3400_s23 }
  0x54   : > { %p3654_p13 = pnand %p4503_p0, %p3595_p10  ;;  %s3660_s18 = smul.u32 3, %s4505_s24 }
  0x55   : > { %s3663_s21 = scalar_lea.sflag [#allocation4], %s169_s10  ;;  %s3198_s4 = scalar_lea.hbm %s3646_s22, 16384 }
  0x56   : > { %p3199_p1 = scmp.ne.s32.totalorder %s3646_s22, %s3198_s4  ;;  %p3200_p3 = pneg %p3654_p13 }
  0x57   : > { %s3203_s20 = scalar_lea.hbm %s4463_s0, 32768  ;;  %p3204_p10 = scmp.lt.u32.totalorder %s3646_s22, %s4463_s0 }
  0x58   : > { %p3201_p8 = pnand %p3200_p3, %p3199_p1  ;;  %p3205_p0 = scmp.lt.u32.totalorder %s3203_s20, %s3198_s4 }
  0x59   : > { %p3207_p12 = scmp.lt.u32.totalorder %s3198_s4, %s3646_s22 }
  0x5a   : > { %p3202_p2 = pneg %p3201_p8  ;;  %p3206_p7 = por %p3205_p0, %p3204_p10 }
  0x5c   : > { %p3208_p6 = por %p3207_p12, %p3206_p7 }
  0x5e   : > { %p3209_p4 = pnand %p3208_p6, %p3202_p2 }
  0x60   : > { %3212 = shalt.err (!%p3209_p4)
}
  0x61   : > { %s3213_s24 = scalar_lea.vmem %s3648_s3, 16384  ;;  %s3414_s10 = smov [#allocation3]  }
  0x62   : > { %p3214_p1 = scmp.ne.s32.totalorder %s3648_s3, %s3213_s24  ;;  %s3218_s8 = sshll.u32 %s3414_s10, 4  ;;  %s3219_s8 = int_to_ptr.vmem [resolvable:$false] %s3218_s8 }
  0x63   : > { %s3220_s17 = scalar_lea.vmem %s3219_s8, 32768  ;;  %p3221_p9 = scmp.lt.s32.totalorder %s3648_s3, %s3219_s8 }
  0x64   : > { %p3216_p8 = pnand %p3214_p1, %p3200_p3  ;;  %p3222_p10 = scmp.lt.s32.totalorder %s3220_s17, %s3213_s24 }
  0x66   : > { %p3217_p11 = pneg %p3216_p8  ;;  %p3223_p0 = por %p3222_p10, %p3221_p9 }
  0x68   : > { %p3224_p7 = pnand %p3223_p0, %p3217_p11 }
  0x6a   : > { %3227 = shalt.err (!%p3224_p7)
}
  0x6b   : > { %s3415_s20 = smov 256   ;;  %s3416_s15 = smov 16  }
  0x6c   : > { %3034 = dma.hbm_to_vmem [thread:$0]  (!%p3654_p13), %s3646_s22, 16384, %s3648_s3, %s3663_s21, %s3415_s20, %s3415_s20, %s3416_s15  }
  0x6d   : > { %s3696_s10 = scalar_lea.hbm %s4465_s2, %s2904_s1  ;;  %s221_s24 = scalar_lea.vmem [#allocation8], %s3660_s18 }
  0x6e   : > { %s229_s8 = sshll.u32 %s221_s24, 4  ;;  %s3228_s17 = scalar_lea.hbm %s3696_s10, 48  ;;  %s230_s8 = int_to_ptr.vmem [resolvable:$true] %s229_s8 }
  0x6f   : > { %p3229_p9 = scmp.ne.s32.totalorder %s3696_s10, %s3228_s17  ;;  %p4506_p11 = pneg %p3530_p5 }
  0x70   : > { %s3233_s28 = scalar_lea.hbm %s4465_s2, 96  ;;  %p3234_p12 = scmp.lt.u32.totalorder %s3696_s10, %s4465_s2 }
  0x71   : > { %p3231_p4 = pnand %p3229_p9, %p4506_p11  ;;  %p3235_p13 = scmp.lt.u32.totalorder %s3233_s28, %s3228_s17 }
  0x72   : > { %p3237_p2 = scmp.lt.u32.totalorder %s3228_s17, %s3696_s10 }
  0x73   : > { %p3232_p6 = pneg %p3231_p4  ;;  %p3236_p3 = por %p3235_p13, %p3234_p12 }
  0x75   : > { %p3238_p1 = por %p3237_p2, %p3236_p3 }
  0x77   : > { %p3239_p8 = pnand %p3238_p1, %p3232_p6 }
  0x79   : > { %3242 = shalt.err (!%p3239_p8)
}
  0x7a   : > { %s3243_s18 = scalar_lea.vmem %s230_s8, 48  ;;  %p4507_p0 = pmov %p4506_p11 }
  0x7b   : > { %p3244_p10 = scmp.ne.s32.totalorder %s230_s8, %s3243_s18  ;;  %s3417_s20 = smov [#allocation8]  }
  0x7c   : > { %s3248_s15 = sshll.u32 %s3417_s20, 4  ;;  %s3249_s15 = int_to_ptr.vmem [resolvable:$false] %s3248_s15 }
  0x7d   : > { %p3246_p7 = pnand %p3244_p10, %p4507_p0  ;;  %s3250_s4 = scalar_lea.vmem %s3249_s15, 96 }
  0x7e   : > { %p3251_p11 = scmp.lt.s32.totalorder %s230_s8, %s3249_s15  ;;  %p3252_p4 = scmp.lt.s32.totalorder %s3250_s4, %s3243_s18 }
  0x7f   : > { %p3247_p9 = pneg %p3246_p7 }
  0x80   : > { %p3253_p12 = por %p3252_p4, %p3251_p11 }
  0x82   : > { %p3254_p13 = pnand %p3253_p12, %p3247_p9 }
  0x84   : > { %3257 = shalt.err (!%p3254_p13)
}
  0x85   : > { %3040 = dma.hbm_to_vmem [thread:$0]  (!%p3530_p5), %s3696_s10, 48, %s230_s8, %s3541_s11  }
  0x86   : > { %p4508_p6 = scmp.ne.s32.totalorder %s4488_s6, 0 }
  0x87   : > { %s240_s30 = sand.u32 (!%p4508_p6), 1, %s3384_s19   ;;  %p4509_p3 = scmp.ne.s32.totalorder (!%p4508_p6), %s4494_s27, 0 }
  0x88   : > { %238 = sbr.rel (%p4508_p6) target bundleno = 699 (0x2bb), region = 32  ;;  %s2895_s24 = sshll.u32 (!%p4508_p6), %s240_s30, 10 }
  0x89   : > { %s241_s17 = scalar_lea.sflag (!%p4508_p6), [#allocation4], %s240_s30  ;;  %s3722_s3 = scalar_lea.vmem (!%p4508_p6), [#allocation3], %s2895_s24 }
  0x8f   : > { %3343 = dma.done.wait (%p4509_p3), %s241_s17, 16384  }
  0x90   : > { %3345 = vsyncadd (%p4509_p3), %s241_s17, 4294950912  ;;  %s249_s5 = sand.u32 1, %s3576_s7   ;;  %s251_s11 = sand.u32 1, %s3372_s16  }
  0x91   : > { %s3019_s6 = smul.u32 768, %s251_s11  ;;  %s250_s10 = scalar_lea.sflag [#allocation7], %s249_s5 }
  0x92   : > { %p4510_p5 = scmp.ne.s32.totalorder %s4496_s29, 0 }
  0x93   : > { %s3732_s8 = scalar_lea.vmem [#allocation6], %s3019_s6 }
  0x94   : > { %3347 = dma.done.wait (%p4510_p5), %s250_s10, 12336  }
  0x95   : > { %3349 = vsyncadd (%p4510_p5), %s250_s10, 4294954960  ;;  %v3418_v0 = vmov 0.0|0.0   ;;  %v819_v1 = vld [vmem:[%s3732_s8 + $0x8] sm:$0xff]  ;;  %v822_v2 = vld [vmem:[%s3732_s8 + $0x20] sm:$0xff]  ;;  %s3020_s7 = smul.u32 3, %s251_s11  ;;  %s292_s27 = sand.u32 1, %s3360_s13  }
  0x96   : > { %2969 = vmatprep.subr.bf16.mxu1 %v3418_v0  ;;  %v818_v3 = vld [vmem:[%s3732_s8] sm:$0xff]  ;;  %v2905_v4 = vpack.c.bf16 %v822_v2, %v819_v1  ;;  %v821_v5 = vld [vmem:[%s3732_s8 + $0x18] sm:$0xff]  ;;  %v820_v6 = vld [vmem:[%s3732_s8 + $0x10] sm:$0xff]  ;;  %s3021_s22 = smul.u32 1536, %s292_s27  ;;  %s4511_s21 = sld [smem:[#allocation15_spill]] }
  0x97   : > { %v823_v7 = vld [vmem:[%s3732_s8 + $0x28] sm:$0xff]  ;;  %v2907_v8 = vpack.c.bf16 %v821_v5, %v818_v3  ;;  %v825_v10 = vld [vmem:[%s3732_s8 + $0x38] sm:$0xff]  ;;  %v828_v11 = vld [vmem:[%s3732_s8 + $0x50] sm:$0xff]  ;;  %s262_s29 = scalar_lea.vmem [#allocation8], %s3020_s7  ;;  %s4512_s1 = sld [smem:[#allocation16_spill]] }
  0x98   : > { %v2970_v9 = vpack.c.bf16 %v823_v7, %v820_v6  ;;  %v824_v12 = vld [vmem:[%s3732_s8 + $0x30] sm:$0xff]  ;;  %2906 = vmatprep.subr.bf16.mxu0 %v2905_v4  ;;  %v2909_v13 = vpack.c.bf16 %v828_v11, %v825_v10  ;;  %v827_v14 = vld [vmem:[%s3732_s8 + $0x48] sm:$0xff]  ;;  %v826_v15 = vld [vmem:[%s3732_s8 + $0x40] sm:$0xff]  ;;  %s3974_s28 = scalar_lea.vmem [#allocation9], %s3021_s22  ;;  %s4387_s11 = scalar_lea.sflag [#allocation5], %s292_s27 }
  0x99   : > { %v829_v16 = vld [vmem:[%s3732_s8 + $0x58] sm:$0xff]  ;;  %2908 = vmatpush1.bf16.msra.mxu0 %v2907_v8  ;;  %v2911_v17 = vpack.c.bf16 %v827_v14, %v824_v12  ;;  %v831_v19 = vld [vmem:[%s3732_s8 + $0x68] sm:$0xff]  ;;  %v834_v20 = vld [vmem:[%s3732_s8 + $0x80] sm:$0xff]  ;;  %s2745_s30 = sshll.u32 %s3974_s28, 4  ;;  %p4514_p1 = scmp.ne.s32.totalorder %s4501_s9, 0  ;;  %s4379_s30 = int_to_ptr.vmem [resolvable:$true] %s2745_s30 }
  0x9a   : > { %2971 = vmatpush1.bf16.msra.mxu1 %v2970_v9  ;;  %v2973_v18 = vpack.c.bf16 %v829_v16, %v826_v15  ;;  %v830_v21 = vld [vmem:[%s3732_s8 + $0x60] sm:$0xff]  ;;  %2910 = vmatprep.subr.bf16.mxu0 %v2909_v13  ;;  %v2913_v22 = vpack.c.bf16 %v834_v20, %v831_v19  ;;  %v833_v23 = vld [vmem:[%s3732_s8 + $0x78] sm:$0xff]  ;;  %v832_v24 = vld [vmem:[%s3732_s8 + $0x70] sm:$0xff]  ;;  %s3258_s6 = scalar_lea.vmem %s4379_s30, 24576  ;;  %s3419_s10 = smov [#allocation9]  }
  0x9b   : > { %2972 = vmatprep.subr.bf16.mxu1 %v3418_v0  ;;  %v835_v25 = vld [vmem:[%s3732_s8 + $0x88] sm:$0xff]  ;;  %v837_v26 = vld [vmem:[%s3732_s8 + $0x98] sm:$0xff]  ;;  %v840_v27 = vld [vmem:[%s3732_s8 + $0xb0] sm:$0xff]  ;;  %v2915_v28 = vpack.c.bf16 %v833_v23, %v830_v21  ;;  %p3259_p2 = scmp.ne.s32.totalorder %s4379_s30, %s3258_s6 }
  0x9c   : > { %v2976_v29 = vpack.c.bf16 %v835_v25, %v832_v24  ;;  %v836_v30 = vld [vmem:[%s3732_s8 + $0x90] sm:$0xff]  ;;  %v2917_v31 = vpack.c.bf16 %v840_v27, %v837_v26  ;;  %v839_v32 = vld [vmem:[%s3732_s8 + $0xa8] sm:$0xff]  ;;  %v838_v33 = vld [vmem:[%s3732_s8 + $0xa0] sm:$0xff]  ;;  %s2737_s18 = smul.u32 3, %s4511_s21 }
  0x9d   : > { %2912 = vmatpush1.bf16.msra.mxu0 %v2911_v17  ;;  %v841_v34 = vld [vmem:[%s3732_s8 + $0xb8] sm:$0xff]  ;;  %v843_v35 = vld [vmem:[%s3732_s8 + $0xc8] sm:$0xff]  ;;  %v846_v36 = vld [vmem:[%s3732_s8 + $0xe0] sm:$0xff]  ;;  %v2919_v37 = vpack.c.bf16 %v839_v32, %v836_v30  ;;  %s3022_s20 = smul.u32 384, %s4512_s1  ;;  %p3260_p8 = pnand %p3259_p2, %p4514_p1 }
  0x9e   : > { %2974 = vmatpush1.bf16.msra.mxu1 %v2973_v18  ;;  %2914 = vmatprep.subr.bf16.mxu0 %v2913_v22  ;;  %v2979_v38 = vpack.c.bf16 %v841_v34, %v838_v33  ;;  %v842_v39 = vld [vmem:[%s3732_s8 + $0xc0] sm:$0xff]  ;;  %v2921_v40 = vpack.c.bf16 %v846_v36, %v843_v35  ;;  %v845_v41 = vld [vmem:[%s3732_s8 + $0xd8] sm:$0xff]  ;;  %v844_v42 = vld [vmem:[%s3732_s8 + $0xd0] sm:$0xff] }
  0x9f   : > { %2975 = vmatprep.subr.bf16.mxu1 %v3418_v0  ;;  %v847_v43 = vld [vmem:[%s3732_s8 + $0xe8] sm:$0xff]  ;;  %v849_v44 = vld [vmem:[%s3732_s8 + $0xf8] sm:$0xff]  ;;  %v852_v45 = vld [vmem:[%s3732_s8 + $0x110] sm:$0xff]  ;;  %v2923_v46 = vpack.c.bf16 %v845_v41, %v842_v39  ;;  %s2742_s15 = sadd.s32 %s3022_s20, %s2737_s18  ;;  %p3261_p10 = pneg %p3260_p8 }
  0xa0   : > { %v2982_v47 = vpack.c.bf16 %v847_v43, %v844_v42  ;;  %v848_v48 = vld [vmem:[%s3732_s8 + $0xf0] sm:$0xff]  ;;  %v2925_v49 = vpack.c.bf16 %v852_v45, %v849_v44  ;;  %v851_v50 = vld [vmem:[%s3732_s8 + $0x108] sm:$0xff]  ;;  %v850_v51 = vld [vmem:[%s3732_s8 + $0x100] sm:$0xff]  ;;  %s2898_s4 = sshll.u32 %s2742_s15, 7 }
  0xa1   : > { %2916 = vmatpush1.bf16.msra.mxu0 %v2915_v28  ;;  %v853_v52 = vld [vmem:[%s3732_s8 + $0x118] sm:$0xff]  ;;  %v855_v53 = vld [vmem:[%s3732_s8 + $0x128] sm:$0xff]  ;;  %v858_v54 = vld [vmem:[%s3732_s8 + $0x140] sm:$0xff]  ;;  %v2927_v55 = vpack.c.bf16 %v851_v50, %v848_v48 }
  0xa2   : > { %2977 = vmatpush1.bf16.msra.mxu1 %v2976_v29  ;;  %2918 = vmatprep.subr.bf16.mxu0 %v2917_v31  ;;  %v2985_v56 = vpack.c.bf16 %v853_v52, %v850_v51  ;;  %v854_v57 = vld [vmem:[%s3732_s8 + $0x120] sm:$0xff]  ;;  %v2929_v58 = vpack.c.bf16 %v858_v54, %v855_v53  ;;  %v857_v59 = vld [vmem:[%s3732_s8 + $0x138] sm:$0xff]  ;;  %v856_v60 = vld [vmem:[%s3732_s8 + $0x130] sm:$0xff] }
  0xa3   : > { %2978 = vmatprep.subr.bf16.mxu1 %v3418_v0  ;;  %v859_v61 = vld [vmem:[%s3732_s8 + $0x148] sm:$0xff]  ;;  %v861_v62 = vld [vmem:[%s3732_s8 + $0x158] sm:$0xff]  ;;  %v864_v63 = vld [vmem:[%s3732_s8 + $0x170] sm:$0xff]  ;;  %v2931_v1 = vpack.c.bf16 %v857_v59, %v854_v57 }
  0xa4   : > { %v2988_v2 = vpack.c.bf16 %v859_v61, %v856_v60  ;;  %v860_v3 = vld [vmem:[%s3732_s8 + $0x150] sm:$0xff]  ;;  %v2933_v4 = vpack.c.bf16 %v864_v63, %v861_v62  ;;  %v863_v5 = vld [vmem:[%s3732_s8 + $0x168] sm:$0xff]  ;;  %v862_v6 = vld [vmem:[%s3732_s8 + $0x160] sm:$0xff] }
  0xa5   : > { %2920 = vmatpush1.bf16.msra.mxu0 %v2919_v37  ;;  %v865_v7 = vld [vmem:[%s3732_s8 + $0x178] sm:$0xff]  ;;  %v867_v8 = vld [vmem:[%s3732_s8 + $0x188] sm:$0xff]  ;;  %v870_v9 = vld [vmem:[%s3732_s8 + $0x1a0] sm:$0xff]  ;;  %v2935_v10 = vpack.c.bf16 %v863_v5, %v860_v3 }
  0xa6   : > { %2980 = vmatpush1.bf16.msra.mxu1 %v2979_v38  ;;  %2922 = vmatprep.subr.bf16.mxu0 %v2921_v40  ;;  %v2991_v11 = vpack.c.bf16 %v865_v7, %v862_v6  ;;  %v866_v12 = vld [vmem:[%s3732_s8 + $0x180] sm:$0xff]  ;;  %v2937_v13 = vpack.c.bf16 %v870_v9, %v867_v8  ;;  %v869_v14 = vld [vmem:[%s3732_s8 + $0x198] sm:$0xff]  ;;  %v868_v15 = vld [vmem:[%s3732_s8 + $0x190] sm:$0xff] }
  0xa7   : > { %2981 = vmatprep.subr.bf16.mxu1 %v3418_v0  ;;  %v871_v16 = vld [vmem:[%s3732_s8 + $0x1a8] sm:$0xff]  ;;  %v873_v17 = vld [vmem:[%s3732_s8 + $0x1b8] sm:$0xff]  ;;  %v876_v18 = vld [vmem:[%s3732_s8 + $0x1d0] sm:$0xff]  ;;  %v2939_v19 = vpack.c.bf16 %v869_v14, %v866_v12 }
  0xa8   : > { %v2994_v20 = vpack.c.bf16 %v871_v16, %v868_v15  ;;  %v872_v21 = vld [vmem:[%s3732_s8 + $0x1b0] sm:$0xff]  ;;  %v691_v22 = vld [vmem:[%s3722_s3 + $0x8] sm:$0xff]  ;;  %v2941_v23 = vpack.c.bf16 %v876_v18, %v873_v17  ;;  %v874_v25 = vld [vmem:[%s3732_s8 + $0x1c0] sm:$0xff] }
  0xa9   : > { %2924 = vmatpush1.bf16.msra.mxu0 %v2923_v46  ;;  %v875_v24 = vld [vmem:[%s3732_s8 + $0x1c8] sm:$0xff]  ;;  %v877_v26 = vld [vmem:[%s3732_s8 + $0x1d8] sm:$0xff]  ;;  %v882_v28 = vld [vmem:[%s3732_s8 + $0x200] sm:$0xff]  ;;  %978 = vmatprep.mubr.f32.mxu0 %v691_v22 }
  0xaa   : > { %2983 = vmatpush1.bf16.msra.mxu1 %v2982_v47  ;;  %2926 = vmatprep.subr.bf16.mxu0 %v2925_v49  ;;  %v879_v27 = vld [vmem:[%s3732_s8 + $0x1e8] sm:$0xff]  ;;  %v2943_v29 = vpack.c.bf16 %v875_v24, %v872_v21  ;;  %v2997_v30 = vpack.c.bf16 %v877_v26, %v874_v25  ;;  %v878_v31 = vld [vmem:[%s3732_s8 + $0x1e0] sm:$0xff]  ;;  %v881_v33 = vld [vmem:[%s3732_s8 + $0x1f8] sm:$0xff] }
  0xab   : > { %2984 = vmatprep.subr.bf16.mxu1 %v3418_v0  ;;  %1427 = vmatprep.mubr.f32.mxu1 %v691_v22  ;;  %v2945_v32 = vpack.c.bf16 %v882_v28, %v879_v27  ;;  %v880_v34 = vld [vmem:[%s3732_s8 + $0x1f0] sm:$0xff]  ;;  %v883_v35 = vld [vmem:[%s3732_s8 + $0x208] sm:$0xff]  ;;  %v885_v36 = vld [vmem:[%s3732_s8 + $0x218] sm:$0xff]  ;;  %v2947_v38 = vpack.c.bf16 %v881_v33, %v878_v31 }
  0xac   : > { %v888_v37 = vld [vmem:[%s3732_s8 + $0x230] sm:$0xff]  ;;  %v3000_v39 = vpack.c.bf16 %v883_v35, %v880_v34  ;;  %v887_v42 = vld [vmem:[%s3732_s8 + $0x228] sm:$0xff]  ;;  %v886_v43 = vld [vmem:[%s3732_s8 + $0x220] sm:$0xff] }
  0xad   : > { %2928 = vmatpush1.bf16.msra.mxu0 %v2927_v55  ;;  %v884_v40 = vld [vmem:[%s3732_s8 + $0x210] sm:$0xff]  ;;  %v2949_v41 = vpack.c.bf16 %v888_v37, %v885_v36  ;;  %v889_v44 = vld [vmem:[%s3732_s8 + $0x238] sm:$0xff]  ;;  %v891_v45 = vld [vmem:[%s3732_s8 + $0x248] sm:$0xff] }
  0xae   : > { %2986 = vmatpush1.bf16.msra.mxu1 %v2985_v56  ;;  %2930 = vmatprep.subr.bf16.mxu0 %v2929_v58  ;;  %v894_v46 = vld [vmem:[%s3732_s8 + $0x260] sm:$0xff]  ;;  %v2951_v47 = vpack.c.bf16 %v887_v42, %v884_v40  ;;  %v3003_v48 = vpack.c.bf16 %v889_v44, %v886_v43  ;;  %v893_v51 = vld [vmem:[%s3732_s8 + $0x258] sm:$0xff]  ;;  %v892_v52 = vld [vmem:[%s3732_s8 + $0x250] sm:$0xff] }
  0xaf   : > { %2987 = vmatprep.subr.bf16.mxu1 %v3418_v0  ;;  %v890_v49 = vld [vmem:[%s3732_s8 + $0x240] sm:$0xff]  ;;  %v2953_v50 = vpack.c.bf16 %v894_v46, %v891_v45  ;;  %v895_v53 = vld [vmem:[%s3732_s8 + $0x268] sm:$0xff]  ;;  %v897_v54 = vld [vmem:[%s3732_s8 + $0x278] sm:$0xff] }
  0xb0   : > { %v900_v55 = vld [vmem:[%s3732_s8 + $0x290] sm:$0xff]  ;;  %v2955_v56 = vpack.c.bf16 %v893_v51, %v890_v49  ;;  %v3006_v57 = vpack.c.bf16 %v895_v53, %v892_v52  ;;  %v899_v60 = vld [vmem:[%s3732_s8 + $0x288] sm:$0xff]  ;;  %v898_v61 = vld [vmem:[%s3732_s8 + $0x280] sm:$0xff] }
  0xb1   : > { %2932 = vmatpush1.bf16.msra.mxu0 %v2931_v1  ;;  %v896_v58 = vld [vmem:[%s3732_s8 + $0x270] sm:$0xff]  ;;  %v2957_v59 = vpack.c.bf16 %v900_v55, %v897_v54  ;;  %v901_v62 = vld [vmem:[%s3732_s8 + $0x298] sm:$0xff]  ;;  %v903_v63 = vld [vmem:[%s3732_s8 + $0x2a8] sm:$0xff] }
  0xb2   : > { %2989 = vmatpush1.bf16.msra.mxu1 %v2988_v2  ;;  %2934 = vmatprep.subr.bf16.mxu0 %v2933_v4  ;;  %v906_v1 = vld [vmem:[%s3732_s8 + $0x2c0] sm:$0xff]  ;;  %v2959_v2 = vpack.c.bf16 %v899_v60, %v896_v58  ;;  %v3009_v3 = vpack.c.bf16 %v901_v62, %v898_v61  ;;  %v905_v6 = vld [vmem:[%s3732_s8 + $0x2b8] sm:$0xff]  ;;  %v904_v7 = vld [vmem:[%s3732_s8 + $0x2b0] sm:$0xff] }
  0xb3   : > { %2990 = vmatprep.subr.bf16.mxu1 %v3418_v0  ;;  %v902_v4 = vld [vmem:[%s3732_s8 + $0x2a0] sm:$0xff]  ;;  %v2961_v5 = vpack.c.bf16 %v906_v1, %v903_v63  ;;  %v907_v8 = vld [vmem:[%s3732_s8 + $0x2c8] sm:$0xff]  ;;  %v909_v9 = vld [vmem:[%s3732_s8 + $0x2d8] sm:$0xff] }
  0xb4   : > { %v3012_v12 = vpack.c.bf16 %v907_v8, %v904_v7  ;;  %v911_v15 = vld [vmem:[%s3732_s8 + $0x2e8] sm:$0xff]  ;;  %v910_v16 = vld [vmem:[%s3732_s8 + $0x2e0] sm:$0xff]  ;;  %v913_v17 = vld [vmem:[%s3732_s8 + $0x2f8] sm:$0xff] }
  0xb5   : > { %2936 = vmatpush1.bf16.msra.mxu0 %v2935_v10  ;;  %v912_v10 = vld [vmem:[%s3732_s8 + $0x2f0] sm:$0xff]  ;;  %v693_v21 = vld [vmem:[%s3722_s3 + $0x18] sm:$0xff]  ;;  %v699_v26 = vld [vmem:[%s3722_s3 + $0x48] sm:$0xff] }
  0xb6   : > { %2992 = vmatpush1.bf16.msra.mxu1 %v2991_v11  ;;  %2938 = vmatprep.subr.bf16.mxu0 %v2937_v13  ;;  %v2963_v11 = vpack.c.bf16 %v905_v6, %v902_v4  ;;  %v908_v13 = vld [vmem:[%s3732_s8 + $0x2d0] sm:$0xff]  ;;  %v2965_v14 = vpack.c.bf16 %v912_v10, %v909_v9  ;;  %v697_v24 = vld [vmem:[%s3722_s3 + $0x38] sm:$0xff]  ;;  %v698_v27 = vld [vmem:[%s3722_s3 + $0x40] sm:$0xff]  ;;  %s3262_s8 = sshll.u32 %s3419_s10, 4  ;;  %s3263_s8 = int_to_ptr.vmem [resolvable:$false] %s3262_s8 }
  0xb7   : > { %2993 = vmatprep.subr.bf16.mxu1 %v3418_v0  ;;  %v2967_v18 = vpack.c.bf16 %v911_v15, %v908_v13  ;;  %v692_v22 = vld [vmem:[%s3722_s3 + $0x10] sm:$0xff]  ;;  %v701_v28 = vld [vmem:[%s3722_s3 + $0x58] sm:$0xff]  ;;  %v702_v31 = vld [vmem:[%s3722_s3 + $0x60] sm:$0xff]  ;;  %s3264_s7 = scalar_lea.vmem %s3263_s8, 49152  ;;  %p3265_p0 = scmp.lt.s32.totalorder %s4379_s30, %s3263_s8 }
  0xb8   : > { %v696_v25 = vld [vmem:[%s3722_s3 + $0x30] sm:$0xff]  ;;  %v707_v34 = vld [vmem:[%s3722_s3 + $0x88] sm:$0xff]  ;;  %v706_v35 = vld [vmem:[%s3722_s3 + $0x80] sm:$0xff]  ;;  %p3266_p7 = scmp.lt.s32.totalorder %s3264_s7, %s3258_s6 }
  0xb9   : > { %2940 = vmatpush1.bf16.msra.mxu0 %v2939_v19  ;;  %v3015_v19 = vpack.c.bf16 %v913_v17, %v910_v16  ;;  %v704_v33 = vld [vmem:[%s3722_s3 + $0x70] sm:$0xff]  ;;  %v709_v36 = vld [vmem:[%s3722_s3 + $0x98] sm:$0xff]  ;;  %v715_v42 = vld [vmem:[%s3722_s3 + $0xc8] sm:$0xff] }
  0xba   : > { %2995 = vmatpush1.bf16.msra.mxu1 %v2994_v20  ;;  %2942 = vmatprep.subr.bf16.mxu0 %v2941_v23  ;;  %v690_v20 = vld [vmem:[%s3722_s3] sm:$0xff]  ;;  %v695_v23 = vld [vmem:[%s3722_s3 + $0x28] sm:$0xff]  ;;  %v708_v37 = vld [vmem:[%s3722_s3 + $0x90] sm:$0xff]  ;;  %p3267_p9 = por %p3266_p7, %p3265_p0 }
  0xbb   : > { %2996 = vmatprep.subr.bf16.mxu1 %v3418_v0  ;;  %v713_v40 = vld [vmem:[%s3722_s3 + $0xb8] sm:$0xff]  ;;  %v714_v43 = vld [vmem:[%s3722_s3 + $0xc0] sm:$0xff]  ;;  %v716_v45 = vld [vmem:[%s3722_s3 + $0xd0] sm:$0xff] }
  0xbc   : > { %v717_v44 = vld [vmem:[%s3722_s3 + $0xd8] sm:$0xff]  ;;  %v719_v46 = vld [vmem:[%s3722_s3 + $0xe8] sm:$0xff]  ;;  %v720_v49 = vld [vmem:[%s3722_s3 + $0xf0] sm:$0xff]  ;;  %p3268_p11 = pnand %p3267_p9, %p3261_p10 }
  0xbd   : > { %2944 = vmatpush1.bf16.msra.mxu0 %v2943_v29  ;;  %v700_v29 = vld [vmem:[%s3722_s3 + $0x50] sm:$0xff]  ;;  %v722_v51 = vld [vmem:[%s3722_s3 + $0x100] sm:$0xff]  ;;  %v725_v52 = vld [vmem:[%s3722_s3 + $0x118] sm:$0xff] }
  0xbe   : > { %2998 = vmatpush1.bf16.msra.mxu1 %v2997_v30  ;;  %2946 = vmatprep.subr.bf16.mxu0 %v2945_v32  ;;  %v703_v30 = vld [vmem:[%s3722_s3 + $0x68] sm:$0xff]  ;;  %v705_v32 = vld [vmem:[%s3722_s3 + $0x78] sm:$0xff]  ;;  %v724_v53 = vld [vmem:[%s3722_s3 + $0x110] sm:$0xff] }
  0xbf   : > { %2999 = vmatprep.subr.bf16.mxu1 %v3418_v0  ;;  %v727_v54 = vld [vmem:[%s3722_s3 + $0x128] sm:$0xff]  ;;  %v726_v55 = vld [vmem:[%s3722_s3 + $0x120] sm:$0xff]  ;;  %v733_v60 = vld [vmem:[%s3722_s3 + $0x158] sm:$0xff] }
  0xc0   : > { %v731_v58 = vld [vmem:[%s3722_s3 + $0x148] sm:$0xff]  ;;  %v732_v61 = vld [vmem:[%s3722_s3 + $0x150] sm:$0xff]  ;;  %v734_v63 = vld [vmem:[%s3722_s3 + $0x160] sm:$0xff] }
  0xc1   : > { %2948 = vmatpush1.bf16.msra.mxu0 %v2947_v38  ;;  %v711_v38 = vld [vmem:[%s3722_s3 + $0xa8] sm:$0xff]  ;;  %v737_v1 = vld [vmem:[%s3722_s3 + $0x178] sm:$0xff]  ;;  %v738_v4 = vld [vmem:[%s3722_s3 + $0x180] sm:$0xff] }
  0xc2   : > { %3001 = vmatpush1.bf16.msra.mxu1 %v3000_v39  ;;  %2950 = vmatprep.subr.bf16.mxu0 %v2949_v41  ;;  %v710_v39 = vld [vmem:[%s3722_s3 + $0xa0] sm:$0xff]  ;;  %v712_v41 = vld [vmem:[%s3722_s3 + $0xb0] sm:$0xff]  ;;  %v735_v62 = vld [vmem:[%s3722_s3 + $0x168] sm:$0xff] }
  0xc3   : > { %3002 = vmatprep.subr.bf16.mxu1 %v3418_v0  ;;  %v740_v6 = vld [vmem:[%s3722_s3 + $0x190] sm:$0xff]  ;;  %v743_v7 = vld [vmem:[%s3722_s3 + $0x1a8] sm:$0xff]  ;;  %v742_v8 = vld [vmem:[%s3722_s3 + $0x1a0] sm:$0xff] }
  0xc4   : > { %v745_v9 = vld [vmem:[%s3722_s3 + $0x1b8] sm:$0xff]  ;;  %v744_v10 = vld [vmem:[%s3722_s3 + $0x1b0] sm:$0xff]  ;;  %v751_v15 = vld [vmem:[%s3722_s3 + $0x1e8] sm:$0xff] }
  0xc5   : > { %2952 = vmatpush1.bf16.msra.mxu0 %v2951_v47  ;;  %v718_v47 = vld [vmem:[%s3722_s3 + $0xe0] sm:$0xff]  ;;  %v749_v13 = vld [vmem:[%s3722_s3 + $0x1d8] sm:$0xff] }
  0xc6   : > { %3004 = vmatpush1.bf16.msra.mxu1 %v3003_v48  ;;  %2954 = vmatprep.subr.bf16.mxu0 %v2953_v50  ;;  %v721_v48 = vld [vmem:[%s3722_s3 + $0xf8] sm:$0xff]  ;;  %v723_v50 = vld [vmem:[%s3722_s3 + $0x108] sm:$0xff]  ;;  %v750_v16 = vld [vmem:[%s3722_s3 + $0x1e0] sm:$0xff] }
  0xc7   : > { %3005 = vmatprep.subr.bf16.mxu1 %v3418_v0  ;;  %v753_v17 = vld [vmem:[%s3722_s3 + $0x1f8] sm:$0xff] }
  0xc9   : > { %2956 = vmatpush1.bf16.msra.mxu0 %v2955_v56  ;;  %v729_v56 = vld [vmem:[%s3722_s3 + $0x138] sm:$0xff] }
  0xca   : > { %3007 = vmatpush1.bf16.msra.mxu1 %v3006_v57  ;;  %2958 = vmatprep.subr.bf16.mxu0 %v2957_v59  ;;  %v728_v57 = vld [vmem:[%s3722_s3 + $0x130] sm:$0xff]  ;;  %v730_v59 = vld [vmem:[%s3722_s3 + $0x140] sm:$0xff] }
  0xcb   : > { %3008 = vmatprep.subr.bf16.mxu1 %v3418_v0 }
  0xcd   : > { %2960 = vmatpush1.bf16.msra.mxu0 %v2959_v2  ;;  %v736_v2 = vld [vmem:[%s3722_s3 + $0x170] sm:$0xff] }
  0xce   : > { %3010 = vmatpush1.bf16.msra.mxu1 %v3009_v3  ;;  %2962 = vmatprep.subr.bf16.mxu0 %v2961_v5  ;;  %v739_v3 = vld [vmem:[%s3722_s3 + $0x188] sm:$0xff]  ;;  %v741_v5 = vld [vmem:[%s3722_s3 + $0x198] sm:$0xff] }
  0xcf   : > { %3011 = vmatprep.subr.bf16.mxu1 %v3418_v0 }
  0xd1   : > { %2964 = vmatpush1.bf16.msra.mxu0 %v2963_v11  ;;  %v747_v11 = vld [vmem:[%s3722_s3 + $0x1c8] sm:$0xff] }
  0xd2   : > { %3013 = vmatpush1.bf16.msra.mxu1 %v3012_v12  ;;  %2966 = vmatprep.subr.bf16.mxu0 %v2965_v14  ;;  %v746_v12 = vld [vmem:[%s3722_s3 + $0x1c0] sm:$0xff]  ;;  %v748_v14 = vld [vmem:[%s3722_s3 + $0x1d0] sm:$0xff] }
  0xd3   : > { %3014 = vmatprep.subr.bf16.mxu1 %v3418_v0  ;;  %v694_v0 = vld [vmem:[%s3722_s3 + $0x20] sm:$0xff] }
  0xd5   : > { %2968 = vmatpush1.bf16.msra.mxu0 %v2967_v18  ;;  %v752_v18 = vld [vmem:[%s3722_s3 + $0x1f0] sm:$0xff] }
  0xd6   : > { %3016 = vmatpush1.bf16.msra.mxu1 %v3015_v19  ;;  %v755_v19 = vld [vmem:[%s3722_s3 + $0x208] sm:$0xff] }
  0xd8   : > { %979 = vmatmul.mubr.f32.vlgmr.msra.gmra.mrb[0].mxu0 %v690_v20 }
  0xd9   : > { %1428 = vmatmul.mubr.f32.vlgmr.msra.gmra.mrb[0].mxu1 %v690_v20  ;;  %984 = vmatprep.mubr.f32.mxu0 %v693_v21  ;;  %v754_v20 = vld [vmem:[%s3722_s3 + $0x200] sm:$0xff] }
  0xda   : > { %1432 = vmatprep.mubr.f32.mxu1 %v693_v21  ;;  %v757_v21 = vld [vmem:[%s3722_s3 + $0x218] sm:$0xff] }
  0xdc   : > { %985 = vmatmul.mubr.f32.gmra.mrb[2].mxu0 %v692_v22 }
  0xdd   : > { %1433 = vmatmul.mubr.f32.gmra.mrb[2].mxu1 %v692_v22  ;;  %990 = vmatprep.mubr.f32.mxu0 %v695_v23  ;;  %v756_v22 = vld [vmem:[%s3722_s3 + $0x210] sm:$0xff] }
  0xde   : > { %1437 = vmatprep.mubr.f32.mxu1 %v695_v23  ;;  %v759_v23 = vld [vmem:[%s3722_s3 + $0x228] sm:$0xff] }
  0xe0   : > { %991 = vmatmul.mubr.f32.gmra.mrb[4].mxu0 %v694_v0 }
  0xe1   : > { %1438 = vmatmul.mubr.f32.gmra.mrb[4].mxu1 %v694_v0  ;;  %996 = vmatprep.mubr.f32.mxu0 %v697_v24  ;;  %v758_v0 = vld [vmem:[%s3722_s3 + $0x220] sm:$0xff] }
  0xe2   : > { %1442 = vmatprep.mubr.f32.mxu1 %v697_v24  ;;  %v761_v24 = vld [vmem:[%s3722_s3 + $0x238] sm:$0xff] }
  0xe4   : > { %997 = vmatmul.mubr.f32.gmra.mrb[6].mxu0 %v696_v25 }
  0xe5   : > { %1443 = vmatmul.mubr.f32.gmra.mrb[6].mxu1 %v696_v25  ;;  %1002 = vmatprep.mubr.f32.mxu0 %v699_v26  ;;  %v760_v25 = vld [vmem:[%s3722_s3 + $0x230] sm:$0xff] }
  0xe6   : > { %1447 = vmatprep.mubr.f32.mxu1 %v699_v26  ;;  %v763_v26 = vld [vmem:[%s3722_s3 + $0x248] sm:$0xff] }
  0xe8   : > { %1003 = vmatmul.mubr.f32.gmra.mrb[8].mxu0 %v698_v27 }
  0xe9   : > { %1448 = vmatmul.mubr.f32.gmra.mrb[8].mxu1 %v698_v27  ;;  %1008 = vmatprep.mubr.f32.mxu0 %v701_v28  ;;  %v762_v27 = vld [vmem:[%s3722_s3 + $0x240] sm:$0xff] }
  0xea   : > { %1452 = vmatprep.mubr.f32.mxu1 %v701_v28  ;;  %v765_v28 = vld [vmem:[%s3722_s3 + $0x258] sm:$0xff] }
  0xec   : > { %1009 = vmatmul.mubr.f32.gmra.mrb[10].mxu0 %v700_v29 }
  0xed   : > { %1453 = vmatmul.mubr.f32.gmra.mrb[10].mxu1 %v700_v29  ;;  %1014 = vmatprep.mubr.f32.mxu0 %v703_v30  ;;  %v764_v29 = vld [vmem:[%s3722_s3 + $0x250] sm:$0xff] }
  0xee   : > { %1457 = vmatprep.mubr.f32.mxu1 %v703_v30  ;;  %v767_v30 = vld [vmem:[%s3722_s3 + $0x268] sm:$0xff] }
  0xf0   : > { %1015 = vmatmul.mubr.f32.gmra.mrb[12].mxu0 %v702_v31 }
  0xf1   : > { %1458 = vmatmul.mubr.f32.gmra.mrb[12].mxu1 %v702_v31  ;;  %1020 = vmatprep.mubr.f32.mxu0 %v705_v32  ;;  %v766_v31 = vld [vmem:[%s3722_s3 + $0x260] sm:$0xff] }
  0xf2   : > { %1462 = vmatprep.mubr.f32.mxu1 %v705_v32  ;;  %v769_v32 = vld [vmem:[%s3722_s3 + $0x278] sm:$0xff] }
  0xf4   : > { %1021 = vmatmul.mubr.f32.gmra.mrb[14].mxu0 %v704_v33 }
  0xf5   : > { %1463 = vmatmul.mubr.f32.gmra.mrb[14].mxu1 %v704_v33  ;;  %1026 = vmatprep.mubr.f32.mxu0 %v707_v34  ;;  %v768_v33 = vld [vmem:[%s3722_s3 + $0x270] sm:$0xff] }
  0xf6   : > { %1467 = vmatprep.mubr.f32.mxu1 %v707_v34  ;;  %v771_v34 = vld [vmem:[%s3722_s3 + $0x288] sm:$0xff] }
  0xf8   : > { %1027 = vmatmul.mubr.f32.gmra.mrb[16].mxu0 %v706_v35 }
  0xf9   : > { %1468 = vmatmul.mubr.f32.gmra.mrb[16].mxu1 %v706_v35  ;;  %1032 = vmatprep.mubr.f32.mxu0 %v709_v36  ;;  %v770_v35 = vld [vmem:[%s3722_s3 + $0x280] sm:$0xff] }
  0xfa   : > { %1472 = vmatprep.mubr.f32.mxu1 %v709_v36  ;;  %v773_v36 = vld [vmem:[%s3722_s3 + $0x298] sm:$0xff] }
  0xfc   : > { %1033 = vmatmul.mubr.f32.gmra.mrb[18].mxu0 %v708_v37 }
  0xfd   : > { %1473 = vmatmul.mubr.f32.gmra.mrb[18].mxu1 %v708_v37  ;;  %1038 = vmatprep.mubr.f32.mxu0 %v711_v38  ;;  %v772_v37 = vld [vmem:[%s3722_s3 + $0x290] sm:$0xff] }
  0xfe   : > { %1477 = vmatprep.mubr.f32.mxu1 %v711_v38  ;;  %v775_v38 = vld [vmem:[%s3722_s3 + $0x2a8] sm:$0xff] }
 0x100   : > { %1039 = vmatmul.mubr.f32.gmra.mrb[20].mxu0 %v710_v39 }
 0x101   : > { %1478 = vmatmul.mubr.f32.gmra.mrb[20].mxu1 %v710_v39  ;;  %1044 = vmatprep.mubr.f32.mxu0 %v713_v40  ;;  %v774_v39 = vld [vmem:[%s3722_s3 + $0x2a0] sm:$0xff] }
 0x102   : > { %1482 = vmatprep.mubr.f32.mxu1 %v713_v40  ;;  %v777_v40 = vld [vmem:[%s3722_s3 + $0x2b8] sm:$0xff] }
 0x104   : > { %1045 = vmatmul.mubr.f32.gmra.mrb[22].mxu0 %v712_v41 }
 0x105   : > { %1483 = vmatmul.mubr.f32.gmra.mrb[22].mxu1 %v712_v41  ;;  %1050 = vmatprep.mubr.f32.mxu0 %v715_v42  ;;  %v776_v41 = vld [vmem:[%s3722_s3 + $0x2b0] sm:$0xff] }
 0x106   : > { %1487 = vmatprep.mubr.f32.mxu1 %v715_v42  ;;  %v779_v42 = vld [vmem:[%s3722_s3 + $0x2c8] sm:$0xff] }
 0x108   : > { %1051 = vmatmul.mubr.f32.gmra.mrb[24].mxu0 %v714_v43 }
 0x109   : > { %1488 = vmatmul.mubr.f32.gmra.mrb[24].mxu1 %v714_v43  ;;  %1056 = vmatprep.mubr.f32.mxu0 %v717_v44  ;;  %v778_v43 = vld [vmem:[%s3722_s3 + $0x2c0] sm:$0xff] }
 0x10a   : > { %1492 = vmatprep.mubr.f32.mxu1 %v717_v44  ;;  %v781_v44 = vld [vmem:[%s3722_s3 + $0x2d8] sm:$0xff] }
 0x10c   : > { %1057 = vmatmul.mubr.f32.gmra.mrb[26].mxu0 %v716_v45 }
 0x10d   : > { %1493 = vmatmul.mubr.f32.gmra.mrb[26].mxu1 %v716_v45  ;;  %1062 = vmatprep.mubr.f32.mxu0 %v719_v46  ;;  %v780_v45 = vld [vmem:[%s3722_s3 + $0x2d0] sm:$0xff] }
 0x10e   : > { %1497 = vmatprep.mubr.f32.mxu1 %v719_v46  ;;  %v783_v46 = vld [vmem:[%s3722_s3 + $0x2e8] sm:$0xff] }
 0x110   : > { %1063 = vmatmul.mubr.f32.gmra.mrb[28].mxu0 %v718_v47 }
 0x111   : > { %1498 = vmatmul.mubr.f32.gmra.mrb[28].mxu1 %v718_v47  ;;  %1068 = vmatprep.mubr.f32.mxu0 %v721_v48  ;;  %v782_v47 = vld [vmem:[%s3722_s3 + $0x2e0] sm:$0xff] }
 0x112   : > { %1502 = vmatprep.mubr.f32.mxu1 %v721_v48  ;;  %v785_v48 = vld [vmem:[%s3722_s3 + $0x2f8] sm:$0xff] }
 0x114   : > { %1069 = vmatmul.mubr.f32.gmra.mrb[30].mxu0 %v720_v49 }
 0x115   : > { %1503 = vmatmul.mubr.f32.gmra.mrb[30].mxu1 %v720_v49  ;;  %1074 = vmatprep.mubr.f32.mxu0 %v723_v50  ;;  %v784_v49 = vld [vmem:[%s3722_s3 + $0x2f0] sm:$0xff] }
 0x116   : > { %1507 = vmatprep.mubr.f32.mxu1 %v723_v50  ;;  %v787_v50 = vld [vmem:[%s3722_s3 + $0x308] sm:$0xff] }
 0x118   : > { %1075 = vmatmul.mubr.f32.gmra.mrb[32].mxu0 %v722_v51 }
 0x119   : > { %1508 = vmatmul.mubr.f32.gmra.mrb[32].mxu1 %v722_v51  ;;  %1080 = vmatprep.mubr.f32.mxu0 %v725_v52  ;;  %v786_v51 = vld [vmem:[%s3722_s3 + $0x300] sm:$0xff] }
 0x11a   : > { %1512 = vmatprep.mubr.f32.mxu1 %v725_v52  ;;  %v789_v52 = vld [vmem:[%s3722_s3 + $0x318] sm:$0xff] }
 0x11c   : > { %1081 = vmatmul.mubr.f32.gmra.mrb[34].mxu0 %v724_v53 }
 0x11d   : > { %1513 = vmatmul.mubr.f32.gmra.mrb[34].mxu1 %v724_v53  ;;  %1086 = vmatprep.mubr.f32.mxu0 %v727_v54  ;;  %v788_v53 = vld [vmem:[%s3722_s3 + $0x310] sm:$0xff] }
 0x11e   : > { %1517 = vmatprep.mubr.f32.mxu1 %v727_v54  ;;  %v791_v54 = vld [vmem:[%s3722_s3 + $0x328] sm:$0xff] }
 0x120   : > { %1087 = vmatmul.mubr.f32.gmra.mrb[36].mxu0 %v726_v55 }
 0x121   : > { %1518 = vmatmul.mubr.f32.gmra.mrb[36].mxu1 %v726_v55  ;;  %1092 = vmatprep.mubr.f32.mxu0 %v729_v56  ;;  %v2329_v55 = vlaneseq }
 0x122   : > { %1522 = vmatprep.mubr.f32.mxu1 %v729_v56  ;;  %v790_v56 = vld [vmem:[%s3722_s3 + $0x320] sm:$0xff] }
 0x124   : > { %1093 = vmatmul.mubr.f32.gmra.mrb[38].mxu0 %v728_v57 }
 0x125   : > { %1523 = vmatmul.mubr.f32.gmra.mrb[38].mxu1 %v728_v57  ;;  %1098 = vmatprep.mubr.f32.mxu0 %v731_v58  ;;  %v793_v57 = vld [vmem:[%s3722_s3 + $0x338] sm:$0xff] }
 0x126   : > { %1527 = vmatprep.mubr.f32.mxu1 %v731_v58  ;;  %v2330_v58 = vshrl.u32 %v2329_v55, 7 }
 0x128   : > { %1099 = vmatmul.mubr.f32.gmra.mrb[40].mxu0 %v730_v59 }
 0x129   : > { %1528 = vmatmul.mubr.f32.gmra.mrb[40].mxu1 %v730_v59  ;;  %1104 = vmatprep.mubr.f32.mxu0 %v733_v60  ;;  %v792_v59 = vld [vmem:[%s3722_s3 + $0x330] sm:$0xff] }
 0x12a   : > { %1532 = vmatprep.mubr.f32.mxu1 %v733_v60  ;;  %v795_v60 = vld [vmem:[%s3722_s3 + $0x348] sm:$0xff] }
 0x12c   : > { %1105 = vmatmul.mubr.f32.gmra.mrb[42].mxu0 %v732_v61 }
 0x12d   : > { %1533 = vmatmul.mubr.f32.gmra.mrb[42].mxu1 %v732_v61  ;;  %1110 = vmatprep.mubr.f32.mxu0 %v735_v62  ;;  %v2331_v61 = vsub.s32 0, %v2330_v58 }
 0x12e   : > { %1537 = vmatprep.mubr.f32.mxu1 %v735_v62  ;;  %v2339_v62 = vsub.s32 2, %v2330_v58 }
 0x130   : > { %1111 = vmatmul.mubr.f32.gmra.mrb[44].mxu0 %v734_v63 }
 0x131   : > { %1538 = vmatmul.mubr.f32.gmra.mrb[44].mxu1 %v734_v63  ;;  %1116 = vmatprep.mubr.f32.mxu0 %v737_v1  ;;  %v794_v63 = vld [vmem:[%s3722_s3 + $0x340] sm:$0xff] }
 0x132   : > { %1542 = vmatprep.mubr.f32.mxu1 %v737_v1  ;;  %v2327_v1 = vld [vmem:[%s262_s29] sm:$0x7] }
 0x134   : > { %1117 = vmatmul.mubr.f32.gmra.mrb[46].mxu0 %v736_v2 }
 0x135   : > { %1543 = vmatmul.mubr.f32.gmra.mrb[46].mxu1 %v736_v2  ;;  %1122 = vmatprep.mubr.f32.mxu0 %v739_v3  ;;  %v2335_v2 = vsub.s32 1, %v2330_v58 }
 0x136   : > { %1547 = vmatprep.mubr.f32.mxu1 %v739_v3  ;;  %v797_v3 = vld [vmem:[%s3722_s3 + $0x358] sm:$0xff] }
 0x138   : > { %1123 = vmatmul.mubr.f32.gmra.mrb[48].mxu0 %v738_v4 }
 0x139   : > { %1548 = vmatmul.mubr.f32.gmra.mrb[48].mxu1 %v738_v4  ;;  %1128 = vmatprep.mubr.f32.mxu0 %v741_v5  ;;  %v3962_v4 = vrot.slane %v2327_v1, %v2331_v61  ;;  %v811_v61 = vld [vmem:[%s3722_s3 + $0x3c8] sm:$0xff] }
 0x13a   : > { %1552 = vmatprep.mubr.f32.mxu1 %v741_v5  ;;  %v3964_v5 = vrot.slane %v2327_v1, %v2339_v62 }
 0x13c   : > { %1129 = vmatmul.mubr.f32.gmra.mrb[50].mxu0 %v740_v6 }
 0x13d   : > { %1553 = vmatmul.mubr.f32.gmra.mrb[50].mxu1 %v740_v6  ;;  %1134 = vmatprep.mubr.f32.mxu0 %v743_v7  ;;  %v3966_v6 = vrot.slane %v2327_v1, %v2335_v2 }
 0x13e   : > { %1557 = vmatprep.mubr.f32.mxu1 %v743_v7  ;;  %v796_v7 = vld [vmem:[%s3722_s3 + $0x350] sm:$0xff] }
 0x140   : > { %1135 = vmatmul.mubr.f32.gmra.mrb[52].mxu0 %v742_v8 }
 0x141   : > { %1558 = vmatmul.mubr.f32.gmra.mrb[52].mxu1 %v742_v8  ;;  %1140 = vmatprep.mubr.f32.mxu0 %v745_v9  ;;  %v799_v8 = vld [vmem:[%s3722_s3 + $0x368] sm:$0xff] }
 0x142   : > { %1562 = vmatprep.mubr.f32.mxu1 %v745_v9 }
 0x144   : > { %1141 = vmatmul.mubr.f32.gmra.mrb[54].mxu0 %v744_v10 }
 0x145   : > { %1563 = vmatmul.mubr.f32.gmra.mrb[54].mxu1 %v744_v10  ;;  %1146 = vmatprep.mubr.f32.mxu0 %v747_v11 }
 0x146   : > { %1567 = vmatprep.mubr.f32.mxu1 %v747_v11 }
 0x148   : > { %1147 = vmatmul.mubr.f32.gmra.mrb[56].mxu0 %v746_v12 }
 0x149   : > { %1568 = vmatmul.mubr.f32.gmra.mrb[56].mxu1 %v746_v12  ;;  %1152 = vmatprep.mubr.f32.mxu0 %v749_v13 }
 0x14a   : > { %1572 = vmatprep.mubr.f32.mxu1 %v749_v13 }
 0x14c   : > { %1153 = vmatmul.mubr.f32.gmra.mrb[58].mxu0 %v748_v14 }
 0x14d   : > { %1573 = vmatmul.mubr.f32.gmra.mrb[58].mxu1 %v748_v14  ;;  %1158 = vmatprep.mubr.f32.mxu0 %v751_v15 }
 0x14e   : > { %1577 = vmatprep.mubr.f32.mxu1 %v751_v15 }
 0x150   : > { %1159 = vmatmul.mubr.f32.gmra.mrb[60].mxu0 %v750_v16 }
 0x151   : > { %1578 = vmatmul.mubr.f32.gmra.mrb[60].mxu1 %v750_v16  ;;  %1164 = vmatprep.mubr.f32.mxu0 %v753_v17  ;;  %v798_v16 = vld [vmem:[%s3722_s3 + $0x360] sm:$0xff] }
 0x152   : > { %1582 = vmatprep.mubr.f32.mxu1 %v753_v17  ;;  %v801_v17 = vld [vmem:[%s3722_s3 + $0x378] sm:$0xff] }
 0x154   : > { %1165 = vmatmul.mubr.f32.gmra.mrb[62].mxu0 %v752_v18 }
 0x155   : > { %1583 = vmatmul.mubr.f32.gmra.mrb[62].mxu1 %v752_v18  ;;  %1170 = vmatprep.mubr.f32.mxu0 %v755_v19 }
 0x156   : > { %1587 = vmatprep.mubr.f32.mxu1 %v755_v19 }
 0x158   : > { %1171 = vmatmul.mubr.f32.gmra.mrb[64].mxu0 %v754_v20 }
 0x159   : > { %1588 = vmatmul.mubr.f32.gmra.mrb[64].mxu1 %v754_v20  ;;  %1176 = vmatprep.mubr.f32.mxu0 %v757_v21 }
 0x15a   : > { %1592 = vmatprep.mubr.f32.mxu1 %v757_v21 }
 0x15c   : > { %1177 = vmatmul.mubr.f32.gmra.mrb[66].mxu0 %v756_v22 }
 0x15d   : > { %1593 = vmatmul.mubr.f32.gmra.mrb[66].mxu1 %v756_v22  ;;  %1182 = vmatprep.mubr.f32.mxu0 %v759_v23 }
 0x15e   : > { %1597 = vmatprep.mubr.f32.mxu1 %v759_v23 }
 0x160   : > { %1183 = vmatmul.mubr.f32.gmra.mrb[68].mxu0 %v758_v0 }
 0x161   : > { %1598 = vmatmul.mubr.f32.gmra.mrb[68].mxu1 %v758_v0  ;;  %1188 = vmatprep.mubr.f32.mxu0 %v761_v24 }
 0x162   : > { %1602 = vmatprep.mubr.f32.mxu1 %v761_v24  ;;  %v800_v24 = vld [vmem:[%s3722_s3 + $0x370] sm:$0xff] }
 0x164   : > { %1189 = vmatmul.mubr.f32.gmra.mrb[70].mxu0 %v760_v25 }
 0x165   : > { %1603 = vmatmul.mubr.f32.gmra.mrb[70].mxu1 %v760_v25  ;;  %1194 = vmatprep.mubr.f32.mxu0 %v763_v26  ;;  %v803_v25 = vld [vmem:[%s3722_s3 + $0x388] sm:$0xff] }
 0x166   : > { %1607 = vmatprep.mubr.f32.mxu1 %v763_v26 }
 0x168   : > { %1195 = vmatmul.mubr.f32.gmra.mrb[72].mxu0 %v762_v27 }
 0x169   : > { %1608 = vmatmul.mubr.f32.gmra.mrb[72].mxu1 %v762_v27  ;;  %1200 = vmatprep.mubr.f32.mxu0 %v765_v28 }
 0x16a   : > { %1612 = vmatprep.mubr.f32.mxu1 %v765_v28 }
 0x16c   : > { %1201 = vmatmul.mubr.f32.gmra.mrb[74].mxu0 %v764_v29 }
 0x16d   : > { %1613 = vmatmul.mubr.f32.gmra.mrb[74].mxu1 %v764_v29  ;;  %1206 = vmatprep.mubr.f32.mxu0 %v767_v30 }
 0x16e   : > { %1617 = vmatprep.mubr.f32.mxu1 %v767_v30 }
 0x170   : > { %1207 = vmatmul.mubr.f32.gmra.mrb[76].mxu0 %v766_v31 }
 0x171   : > { %1618 = vmatmul.mubr.f32.gmra.mrb[76].mxu1 %v766_v31  ;;  %1212 = vmatprep.mubr.f32.mxu0 %v769_v32 }
 0x172   : > { %1622 = vmatprep.mubr.f32.mxu1 %v769_v32 }
 0x174   : > { %1213 = vmatmul.mubr.f32.gmra.mrb[78].mxu0 %v768_v33 }
 0x175   : > { %1623 = vmatmul.mubr.f32.gmra.mrb[78].mxu1 %v768_v33  ;;  %1218 = vmatprep.mubr.f32.mxu0 %v771_v34  ;;  %v802_v33 = vld [vmem:[%s3722_s3 + $0x380] sm:$0xff] }
 0x176   : > { %1627 = vmatprep.mubr.f32.mxu1 %v771_v34  ;;  %v805_v34 = vld [vmem:[%s3722_s3 + $0x398] sm:$0xff] }
 0x178   : > { %1219 = vmatmul.mubr.f32.gmra.mrb[80].mxu0 %v770_v35 }
 0x179   : > { %1628 = vmatmul.mubr.f32.gmra.mrb[80].mxu1 %v770_v35  ;;  %1224 = vmatprep.mubr.f32.mxu0 %v773_v36 }
 0x17a   : > { %1632 = vmatprep.mubr.f32.mxu1 %v773_v36 }
 0x17c   : > { %1225 = vmatmul.mubr.f32.gmra.mrb[82].mxu0 %v772_v37 }
 0x17d   : > { %1633 = vmatmul.mubr.f32.gmra.mrb[82].mxu1 %v772_v37  ;;  %1230 = vmatprep.mubr.f32.mxu0 %v775_v38 }
 0x17e   : > { %1637 = vmatprep.mubr.f32.mxu1 %v775_v38 }
 0x180   : > { %1231 = vmatmul.mubr.f32.gmra.mrb[84].mxu0 %v774_v39 }
 0x181   : > { %1638 = vmatmul.mubr.f32.gmra.mrb[84].mxu1 %v774_v39  ;;  %1236 = vmatprep.mubr.f32.mxu0 %v777_v40 }
 0x182   : > { %1642 = vmatprep.mubr.f32.mxu1 %v777_v40 }
 0x184   : > { %1237 = vmatmul.mubr.f32.gmra.mrb[86].mxu0 %v776_v41 }
 0x185   : > { %1643 = vmatmul.mubr.f32.gmra.mrb[86].mxu1 %v776_v41  ;;  %1242 = vmatprep.mubr.f32.mxu0 %v779_v42 }
 0x186   : > { %1647 = vmatprep.mubr.f32.mxu1 %v779_v42  ;;  %v804_v42 = vld [vmem:[%s3722_s3 + $0x390] sm:$0xff] }
 0x188   : > { %1243 = vmatmul.mubr.f32.gmra.mrb[88].mxu0 %v778_v43 }
 0x189   : > { %1648 = vmatmul.mubr.f32.gmra.mrb[88].mxu1 %v778_v43  ;;  %1248 = vmatprep.mubr.f32.mxu0 %v781_v44  ;;  %v807_v43 = vld [vmem:[%s3722_s3 + $0x3a8] sm:$0xff] }
 0x18a   : > { %1652 = vmatprep.mubr.f32.mxu1 %v781_v44 }
 0x18c   : > { %1249 = vmatmul.mubr.f32.gmra.mrb[90].mxu0 %v780_v45 }
 0x18d   : > { %1653 = vmatmul.mubr.f32.gmra.mrb[90].mxu1 %v780_v45  ;;  %1254 = vmatprep.mubr.f32.mxu0 %v783_v46 }
 0x18e   : > { %1657 = vmatprep.mubr.f32.mxu1 %v783_v46 }
 0x190   : > { %1255 = vmatmul.mubr.f32.gmra.mrb[92].mxu0 %v782_v47 }
 0x191   : > { %1658 = vmatmul.mubr.f32.gmra.mrb[92].mxu1 %v782_v47  ;;  %1260 = vmatprep.mubr.f32.mxu0 %v785_v48 }
 0x192   : > { %1662 = vmatprep.mubr.f32.mxu1 %v785_v48 }
 0x194   : > { %1261 = vmatmul.mubr.f32.gmra.mrb[94].mxu0 %v784_v49 }
 0x195   : > { %1663 = vmatmul.mubr.f32.gmra.mrb[94].mxu1 %v784_v49  ;;  %1266 = vmatprep.mubr.f32.mxu0 %v787_v50 }
 0x196   : > { %1667 = vmatprep.mubr.f32.mxu1 %v787_v50 }
 0x198   : > { %1267 = vmatmul.mubr.f32.gmra.mrb[96].mxu0 %v786_v51 }
 0x199   : > { %1668 = vmatmul.mubr.f32.gmra.mrb[96].mxu1 %v786_v51  ;;  %1272 = vmatprep.mubr.f32.mxu0 %v789_v52  ;;  %v806_v51 = vld [vmem:[%s3722_s3 + $0x3a0] sm:$0xff] }
 0x19a   : > { %1672 = vmatprep.mubr.f32.mxu1 %v789_v52  ;;  %v809_v52 = vld [vmem:[%s3722_s3 + $0x3b8] sm:$0xff] }
 0x19c   : > { %1273 = vmatmul.mubr.f32.gmra.mrb[98].mxu0 %v788_v53 }
 0x19d   : > { %1673 = vmatmul.mubr.f32.gmra.mrb[98].mxu1 %v788_v53  ;;  %1278 = vmatprep.mubr.f32.mxu0 %v791_v54 }
 0x19e   : > { %1677 = vmatprep.mubr.f32.mxu1 %v791_v54 }
 0x1a0   : > { %1279 = vmatmul.mubr.f32.gmra.mrb[100].mxu0 %v790_v56 }
 0x1a1   : > { %1678 = vmatmul.mubr.f32.gmra.mrb[100].mxu1 %v790_v56  ;;  %1284 = vmatprep.mubr.f32.mxu0 %v793_v57 }
 0x1a2   : > { %1682 = vmatprep.mubr.f32.mxu1 %v793_v57 }
 0x1a4   : > { %1285 = vmatmul.mubr.f32.gmra.mrb[102].mxu0 %v792_v59 }
 0x1a5   : > { %1683 = vmatmul.mubr.f32.gmra.mrb[102].mxu1 %v792_v59  ;;  %1290 = vmatprep.mubr.f32.mxu0 %v795_v60 }
 0x1a6   : > { %1687 = vmatprep.mubr.f32.mxu1 %v795_v60  ;;  %v808_v60 = vld [vmem:[%s3722_s3 + $0x3b0] sm:$0xff] }
 0x1a8   : > { %1291 = vmatmul.mubr.f32.gmra.mrb[104].mxu0 %v794_v63 }
 0x1a9   : > { %1688 = vmatmul.mubr.f32.gmra.mrb[104].mxu1 %v794_v63  ;;  %1296 = vmatprep.mubr.f32.mxu0 %v797_v3 }
 0x1aa   : > { %1692 = vmatprep.mubr.f32.mxu1 %v797_v3 }
 0x1ab   : > { %v980_v9 = vpop.f32.mrb[0].mxu0 }
 0x1ac   : > { %v1429_v10 = vpop.f32.mrb[0].mxu1  ;;  %v2344_v11 = vadd.f32 %v3962_v4, %v980_v9  ;;  %v982_v13 = vpop.f32.mrb[1].mxu0  ;;  %1297 = vmatmul.mubr.f32.gmra.mrb[106].mxu0 %v796_v7  ;;  %v810_v9 = vld [vmem:[%s3722_s3 + $0x3c0] sm:$0xff] }
 0x1ad   : > { %v2346_v12 = vadd.f32 %v3964_v5, %v1429_v10  ;;  %v1431_v14 = vpop.f32.mrb[1].mxu1  ;;  %1693 = vmatmul.mubr.f32.gmra.mrb[106].mxu1 %v796_v7  ;;  %v2345_v15 = vadd.f32 %v3966_v6, %v982_v13  ;;  %1302 = vmatprep.mubr.f32.mxu0 %v799_v8  ;;  %v813_v10 = vld [vmem:[%s3722_s3 + $0x3d8] sm:$0xff] }
 0x1ae   : > { %1697 = vmatprep.mubr.f32.mxu1 %v799_v8  ;;  %2536 = vst [vmem:[%s3974_s28] sm:$0xff] %v2344_v11 }
 0x1af   : > { %2538 = vst [vmem:[%s3974_s28 + $0x10] sm:$0xff] %v2346_v12  ;;  %2537 = vst [vmem:[%s3974_s28 + $0x8] sm:$0xff] %v2345_v15  ;;  %v986_v18 = vpop.f32.mrb[2].mxu0 }
 0x1b0   : > { %v1434_v19 = vpop.f32.mrb[2].mxu1  ;;  %v2347_v20 = vadd.f32 %v3962_v4, %v986_v18  ;;  %v988_v22 = vpop.f32.mrb[3].mxu0  ;;  %1303 = vmatmul.mubr.f32.gmra.mrb[108].mxu0 %v798_v16  ;;  %v812_v18 = vld [vmem:[%s3722_s3 + $0x3d0] sm:$0xff] }
 0x1b1   : > { %v2349_v21 = vadd.f32 %v3964_v5, %v1434_v19  ;;  %v1436_v23 = vpop.f32.mrb[3].mxu1  ;;  %1698 = vmatmul.mubr.f32.gmra.mrb[108].mxu1 %v798_v16  ;;  %v2348_v0 = vadd.f32 %v3966_v6, %v988_v22  ;;  %1308 = vmatprep.mubr.f32.mxu0 %v801_v17  ;;  %v815_v19 = vld [vmem:[%s3722_s3 + $0x3e8] sm:$0xff] }
 0x1b2   : > { %1702 = vmatprep.mubr.f32.mxu1 %v801_v17  ;;  %2539 = vst [vmem:[%s3974_s28 + $0x18] sm:$0xff] %v2347_v20 }
 0x1b3   : > { %2541 = vst [vmem:[%s3974_s28 + $0x28] sm:$0xff] %v2349_v21  ;;  %2540 = vst [vmem:[%s3974_s28 + $0x20] sm:$0xff] %v2348_v0  ;;  %v992_v26 = vpop.f32.mrb[4].mxu0 }
 0x1b4   : > { %v1439_v27 = vpop.f32.mrb[4].mxu1  ;;  %v2350_v28 = vadd.f32 %v3962_v4, %v992_v26  ;;  %v994_v30 = vpop.f32.mrb[5].mxu0  ;;  %1309 = vmatmul.mubr.f32.gmra.mrb[110].mxu0 %v800_v24  ;;  %v814_v26 = vld [vmem:[%s3722_s3 + $0x3e0] sm:$0xff] }
 0x1b5   : > { %v2352_v29 = vadd.f32 %v3964_v5, %v1439_v27  ;;  %v1441_v31 = vpop.f32.mrb[5].mxu1  ;;  %1703 = vmatmul.mubr.f32.gmra.mrb[110].mxu1 %v800_v24  ;;  %v2351_v32 = vadd.f32 %v3966_v6, %v994_v30  ;;  %1314 = vmatprep.mubr.f32.mxu0 %v803_v25  ;;  %v817_v27 = vld [vmem:[%s3722_s3 + $0x3f8] sm:$0xff] }
 0x1b6   : > { %1707 = vmatprep.mubr.f32.mxu1 %v803_v25  ;;  %2542 = vst [vmem:[%s3974_s28 + $0x30] sm:$0xff] %v2350_v28 }
 0x1b7   : > { %2544 = vst [vmem:[%s3974_s28 + $0x40] sm:$0xff] %v2352_v29  ;;  %2543 = vst [vmem:[%s3974_s28 + $0x38] sm:$0xff] %v2351_v32  ;;  %v998_v35 = vpop.f32.mrb[6].mxu0 }
 0x1b8   : > { %v1444_v36 = vpop.f32.mrb[6].mxu1  ;;  %v2353_v37 = vadd.f32 %v3962_v4, %v998_v35  ;;  %v1000_v39 = vpop.f32.mrb[7].mxu0  ;;  %1315 = vmatmul.mubr.f32.gmra.mrb[112].mxu0 %v802_v33  ;;  %v816_v35 = vld [vmem:[%s3722_s3 + $0x3f0] sm:$0xff]  ;;  %s4513_s3 = sld [smem:[#allocation24_spill]] }
 0x1b9   : > { %v2355_v38 = vadd.f32 %v3964_v5, %v1444_v36  ;;  %v1446_v40 = vpop.f32.mrb[7].mxu1  ;;  %1708 = vmatmul.mubr.f32.gmra.mrb[112].mxu1 %v802_v33  ;;  %v2354_v41 = vadd.f32 %v3966_v6, %v1000_v39  ;;  %1320 = vmatprep.mubr.f32.mxu0 %v805_v34 }
 0x1ba   : > { %1712 = vmatprep.mubr.f32.mxu1 %v805_v34  ;;  %2545 = vst [vmem:[%s3974_s28 + $0x48] sm:$0xff] %v2353_v37 }
 0x1bb   : > { %2547 = vst [vmem:[%s3974_s28 + $0x58] sm:$0xff] %v2355_v38  ;;  %2546 = vst [vmem:[%s3974_s28 + $0x50] sm:$0xff] %v2354_v41  ;;  %v1004_v44 = vpop.f32.mrb[8].mxu0 }
 0x1bc   : > { %v1449_v45 = vpop.f32.mrb[8].mxu1  ;;  %v2356_v46 = vadd.f32 %v3962_v4, %v1004_v44  ;;  %v1006_v48 = vpop.f32.mrb[9].mxu0  ;;  %1321 = vmatmul.mubr.f32.gmra.mrb[114].mxu0 %v804_v42 }
 0x1bd   : > { %v2358_v47 = vadd.f32 %v3964_v5, %v1449_v45  ;;  %v1451_v49 = vpop.f32.mrb[9].mxu1  ;;  %1713 = vmatmul.mubr.f32.gmra.mrb[114].mxu1 %v804_v42  ;;  %v2357_v50 = vadd.f32 %v3966_v6, %v1006_v48  ;;  %1326 = vmatprep.mubr.f32.mxu0 %v807_v43 }
 0x1be   : > { %1717 = vmatprep.mubr.f32.mxu1 %v807_v43  ;;  %2548 = vst [vmem:[%s3974_s28 + $0x60] sm:$0xff] %v2356_v46  ;;  %s4375_s5 = scalar_lea.hbm %s4513_s3, %s2898_s4 }
 0x1bf   : > { %2550 = vst [vmem:[%s3974_s28 + $0x70] sm:$0xff] %v2358_v47  ;;  %2549 = vst [vmem:[%s3974_s28 + $0x68] sm:$0xff] %v2357_v50  ;;  %v1010_v53 = vpop.f32.mrb[10].mxu0 }
 0x1c0   : > { %v1454_v54 = vpop.f32.mrb[10].mxu1  ;;  %v2359_v55 = vadd.f32 %v3962_v4, %v1010_v53  ;;  %v1012_v57 = vpop.f32.mrb[11].mxu0  ;;  %1327 = vmatmul.mubr.f32.gmra.mrb[116].mxu0 %v806_v51 }
 0x1c1   : > { %v2361_v56 = vadd.f32 %v3964_v5, %v1454_v54  ;;  %v1456_v58 = vpop.f32.mrb[11].mxu1  ;;  %1718 = vmatmul.mubr.f32.gmra.mrb[116].mxu1 %v806_v51  ;;  %v2360_v59 = vadd.f32 %v3966_v6, %v1012_v57  ;;  %1332 = vmatprep.mubr.f32.mxu0 %v809_v52 }
 0x1c2   : > { %1722 = vmatprep.mubr.f32.mxu1 %v809_v52  ;;  %2551 = vst [vmem:[%s3974_s28 + $0x78] sm:$0xff] %v2359_v55 }
 0x1c3   : > { %2553 = vst [vmem:[%s3974_s28 + $0x88] sm:$0xff] %v2361_v56  ;;  %2552 = vst [vmem:[%s3974_s28 + $0x80] sm:$0xff] %v2360_v59  ;;  %v1016_v62 = vpop.f32.mrb[12].mxu0 }
 0x1c4   : > { %v1459_v63 = vpop.f32.mrb[12].mxu1  ;;  %v2362_v1 = vadd.f32 %v3962_v4, %v1016_v62  ;;  %v1018_v3 = vpop.f32.mrb[13].mxu0  ;;  %1333 = vmatmul.mubr.f32.gmra.mrb[118].mxu0 %v808_v60 }
 0x1c5   : > { %v2364_v2 = vadd.f32 %v3964_v5, %v1459_v63  ;;  %v1461_v7 = vpop.f32.mrb[13].mxu1  ;;  %1723 = vmatmul.mubr.f32.gmra.mrb[118].mxu1 %v808_v60  ;;  %v2363_v8 = vadd.f32 %v3966_v6, %v1018_v3  ;;  %1338 = vmatprep.mubr.f32.mxu0 %v811_v61 }
 0x1c6   : > { %1727 = vmatprep.mubr.f32.mxu1 %v811_v61  ;;  %2554 = vst [vmem:[%s3974_s28 + $0x90] sm:$0xff] %v2362_v1 }
 0x1c7   : > { %2556 = vst [vmem:[%s3974_s28 + $0xa0] sm:$0xff] %v2364_v2  ;;  %2555 = vst [vmem:[%s3974_s28 + $0x98] sm:$0xff] %v2363_v8  ;;  %v1022_v11 = vpop.f32.mrb[14].mxu0 }
 0x1c8   : > { %v1464_v12 = vpop.f32.mrb[14].mxu1  ;;  %v2365_v13 = vadd.f32 %v3962_v4, %v1022_v11  ;;  %v1024_v15 = vpop.f32.mrb[15].mxu0  ;;  %1339 = vmatmul.mubr.f32.gmra.mrb[120].mxu0 %v810_v9 }
 0x1c9   : > { %v2367_v14 = vadd.f32 %v3964_v5, %v1464_v12  ;;  %v1466_v16 = vpop.f32.mrb[15].mxu1  ;;  %1728 = vmatmul.mubr.f32.gmra.mrb[120].mxu1 %v810_v9  ;;  %v2366_v17 = vadd.f32 %v3966_v6, %v1024_v15  ;;  %1344 = vmatprep.mubr.f32.mxu0 %v813_v10 }
 0x1ca   : > { %1732 = vmatprep.mubr.f32.mxu1 %v813_v10  ;;  %2557 = vst [vmem:[%s3974_s28 + $0xa8] sm:$0xff] %v2365_v13 }
 0x1cb   : > { %2559 = vst [vmem:[%s3974_s28 + $0xb8] sm:$0xff] %v2367_v14  ;;  %2558 = vst [vmem:[%s3974_s28 + $0xb0] sm:$0xff] %v2366_v17  ;;  %v1028_v20 = vpop.f32.mrb[16].mxu0 }
 0x1cc   : > { %v1469_v21 = vpop.f32.mrb[16].mxu1  ;;  %v2368_v22 = vadd.f32 %v3962_v4, %v1028_v20  ;;  %v1030_v0 = vpop.f32.mrb[17].mxu0  ;;  %1345 = vmatmul.mubr.f32.gmra.mrb[122].mxu0 %v812_v18 }
 0x1cd   : > { %v2370_v23 = vadd.f32 %v3964_v5, %v1469_v21  ;;  %v1471_v24 = vpop.f32.mrb[17].mxu1  ;;  %1733 = vmatmul.mubr.f32.gmra.mrb[122].mxu1 %v812_v18  ;;  %v2369_v25 = vadd.f32 %v3966_v6, %v1030_v0  ;;  %1350 = vmatprep.mubr.f32.mxu0 %v815_v19 }
 0x1ce   : > { %1737 = vmatprep.mubr.f32.mxu1 %v815_v19  ;;  %2560 = vst [vmem:[%s3974_s28 + $0xc0] sm:$0xff] %v2368_v22 }
 0x1cf   : > { %2562 = vst [vmem:[%s3974_s28 + $0xd0] sm:$0xff] %v2370_v23  ;;  %2561 = vst [vmem:[%s3974_s28 + $0xc8] sm:$0xff] %v2369_v25  ;;  %v1034_v28 = vpop.f32.mrb[18].mxu0 }
 0x1d0   : > { %v1474_v29 = vpop.f32.mrb[18].mxu1  ;;  %v2371_v30 = vadd.f32 %v3962_v4, %v1034_v28  ;;  %v1036_v32 = vpop.f32.mrb[19].mxu0  ;;  %1351 = vmatmul.mubr.f32.gmra.mrb[124].mxu0 %v814_v26 }
 0x1d1   : > { %v2373_v31 = vadd.f32 %v3964_v5, %v1474_v29  ;;  %v1476_v33 = vpop.f32.mrb[19].mxu1  ;;  %1738 = vmatmul.mubr.f32.gmra.mrb[124].mxu1 %v814_v26  ;;  %v2372_v34 = vadd.f32 %v3966_v6, %v1036_v32  ;;  %1356 = vmatprep.mubr.f32.mxu0 %v817_v27 }
 0x1d2   : > { %1742 = vmatprep.mubr.f32.mxu1 %v817_v27  ;;  %2563 = vst [vmem:[%s3974_s28 + $0xd8] sm:$0xff] %v2371_v30 }
 0x1d3   : > { %2565 = vst [vmem:[%s3974_s28 + $0xe8] sm:$0xff] %v2373_v31  ;;  %2564 = vst [vmem:[%s3974_s28 + $0xe0] sm:$0xff] %v2372_v34  ;;  %v1040_v36 = vpop.f32.mrb[20].mxu0 }
 0x1d4   : > { %v1479_v37 = vpop.f32.mrb[20].mxu1  ;;  %v2374_v38 = vadd.f32 %v3962_v4, %v1040_v36  ;;  %v1042_v40 = vpop.f32.mrb[21].mxu0  ;;  %1357 = vmatmul.mubr.f32.gmra.mrb[126].mxu0 %v816_v35 }
 0x1d5   : > { %v2376_v39 = vadd.f32 %v3964_v5, %v1479_v37  ;;  %v1481_v41 = vpop.f32.mrb[21].mxu1  ;;  %1743 = vmatmul.mubr.f32.gmra.mrb[126].mxu1 %v816_v35  ;;  %v2375_v42 = vadd.f32 %v3966_v6, %v1042_v40 }
 0x1d6   : > { %2566 = vst [vmem:[%s3974_s28 + $0xf0] sm:$0xff] %v2374_v38 }
 0x1d7   : > { %2568 = vst [vmem:[%s3974_s28 + $0x100] sm:$0xff] %v2376_v39  ;;  %2567 = vst [vmem:[%s3974_s28 + $0xf8] sm:$0xff] %v2375_v42  ;;  %v1046_v43 = vpop.f32.mrb[22].mxu0 }
 0x1d8   : > { %v1484_v44 = vpop.f32.mrb[22].mxu1  ;;  %v2377_v45 = vadd.f32 %v3962_v4, %v1046_v43  ;;  %v1048_v47 = vpop.f32.mrb[23].mxu0 }
 0x1d9   : > { %v2379_v46 = vadd.f32 %v3964_v5, %v1484_v44  ;;  %v1486_v48 = vpop.f32.mrb[23].mxu1  ;;  %v2378_v49 = vadd.f32 %v3966_v6, %v1048_v47 }
 0x1da   : > { %2569 = vst [vmem:[%s3974_s28 + $0x108] sm:$0xff] %v2377_v45 }
 0x1db   : > { %2571 = vst [vmem:[%s3974_s28 + $0x118] sm:$0xff] %v2379_v46  ;;  %2570 = vst [vmem:[%s3974_s28 + $0x110] sm:$0xff] %v2378_v49  ;;  %v1052_v50 = vpop.f32.mrb[24].mxu0 }
 0x1dc   : > { %v1489_v51 = vpop.f32.mrb[24].mxu1  ;;  %v2380_v52 = vadd.f32 %v3962_v4, %v1052_v50  ;;  %v1054_v54 = vpop.f32.mrb[25].mxu0 }
 0x1dd   : > { %v2382_v53 = vadd.f32 %v3964_v5, %v1489_v51  ;;  %v1491_v55 = vpop.f32.mrb[25].mxu1  ;;  %v2381_v56 = vadd.f32 %v3966_v6, %v1054_v54 }
 0x1de   : > { %2572 = vst [vmem:[%s3974_s28 + $0x120] sm:$0xff] %v2380_v52 }
 0x1df   : > { %2574 = vst [vmem:[%s3974_s28 + $0x130] sm:$0xff] %v2382_v53  ;;  %2573 = vst [vmem:[%s3974_s28 + $0x128] sm:$0xff] %v2381_v56  ;;  %v1058_v57 = vpop.f32.mrb[26].mxu0 }
 0x1e0   : > { %v1494_v58 = vpop.f32.mrb[26].mxu1  ;;  %v2383_v59 = vadd.f32 %v3962_v4, %v1058_v57  ;;  %v1060_v61 = vpop.f32.mrb[27].mxu0 }
 0x1e1   : > { %v2385_v60 = vadd.f32 %v3964_v5, %v1494_v58  ;;  %v1496_v62 = vpop.f32.mrb[27].mxu1  ;;  %v2384_v63 = vadd.f32 %v3966_v6, %v1060_v61 }
 0x1e2   : > { %2575 = vst [vmem:[%s3974_s28 + $0x138] sm:$0xff] %v2383_v59 }
 0x1e3   : > { %2577 = vst [vmem:[%s3974_s28 + $0x148] sm:$0xff] %v2385_v60  ;;  %2576 = vst [vmem:[%s3974_s28 + $0x140] sm:$0xff] %v2384_v63  ;;  %v1064_v1 = vpop.f32.mrb[28].mxu0 }
 0x1e4   : > { %v1499_v2 = vpop.f32.mrb[28].mxu1  ;;  %v2386_v3 = vadd.f32 %v3962_v4, %v1064_v1  ;;  %v1066_v8 = vpop.f32.mrb[29].mxu0 }
 0x1e5   : > { %v2388_v7 = vadd.f32 %v3964_v5, %v1499_v2  ;;  %v1501_v9 = vpop.f32.mrb[29].mxu1  ;;  %v2387_v10 = vadd.f32 %v3966_v6, %v1066_v8 }
 0x1e6   : > { %2578 = vst [vmem:[%s3974_s28 + $0x150] sm:$0xff] %v2386_v3 }
 0x1e7   : > { %2580 = vst [vmem:[%s3974_s28 + $0x160] sm:$0xff] %v2388_v7  ;;  %2579 = vst [vmem:[%s3974_s28 + $0x158] sm:$0xff] %v2387_v10  ;;  %v1070_v11 = vpop.f32.mrb[30].mxu0 }
 0x1e8   : > { %v1504_v12 = vpop.f32.mrb[30].mxu1  ;;  %v2389_v13 = vadd.f32 %v3962_v4, %v1070_v11  ;;  %v1072_v15 = vpop.f32.mrb[31].mxu0 }
 0x1e9   : > { %v2391_v14 = vadd.f32 %v3964_v5, %v1504_v12  ;;  %v1506_v16 = vpop.f32.mrb[31].mxu1  ;;  %v2390_v17 = vadd.f32 %v3966_v6, %v1072_v15 }
 0x1ea   : > { %2581 = vst [vmem:[%s3974_s28 + $0x168] sm:$0xff] %v2389_v13 }
 0x1eb   : > { %2583 = vst [vmem:[%s3974_s28 + $0x178] sm:$0xff] %v2391_v14  ;;  %2582 = vst [vmem:[%s3974_s28 + $0x170] sm:$0xff] %v2390_v17  ;;  %v1076_v18 = vpop.f32.mrb[32].mxu0 }
 0x1ec   : > { %v1509_v19 = vpop.f32.mrb[32].mxu1  ;;  %v2392_v20 = vadd.f32 %v3962_v4, %v1076_v18  ;;  %v1078_v22 = vpop.f32.mrb[33].mxu0 }
 0x1ed   : > { %v2394_v21 = vadd.f32 %v3964_v5, %v1509_v19  ;;  %v1511_v23 = vpop.f32.mrb[33].mxu1  ;;  %v2393_v0 = vadd.f32 %v3966_v6, %v1078_v22 }
 0x1ee   : > { %2584 = vst [vmem:[%s3974_s28 + $0x180] sm:$0xff] %v2392_v20 }
 0x1ef   : > { %2586 = vst [vmem:[%s3974_s28 + $0x190] sm:$0xff] %v2394_v21  ;;  %2585 = vst [vmem:[%s3974_s28 + $0x188] sm:$0xff] %v2393_v0  ;;  %v1082_v24 = vpop.f32.mrb[34].mxu0 }
 0x1f0   : > { %v1514_v25 = vpop.f32.mrb[34].mxu1  ;;  %v2395_v26 = vadd.f32 %v3962_v4, %v1082_v24  ;;  %v1084_v28 = vpop.f32.mrb[35].mxu0 }
 0x1f1   : > { %v2397_v27 = vadd.f32 %v3964_v5, %v1514_v25  ;;  %v1516_v29 = vpop.f32.mrb[35].mxu1  ;;  %v2396_v30 = vadd.f32 %v3966_v6, %v1084_v28 }
 0x1f2   : > { %2587 = vst [vmem:[%s3974_s28 + $0x198] sm:$0xff] %v2395_v26 }
 0x1f3   : > { %2589 = vst [vmem:[%s3974_s28 + $0x1a8] sm:$0xff] %v2397_v27  ;;  %2588 = vst [vmem:[%s3974_s28 + $0x1a0] sm:$0xff] %v2396_v30  ;;  %v1088_v31 = vpop.f32.mrb[36].mxu0 }
 0x1f4   : > { %v1519_v32 = vpop.f32.mrb[36].mxu1  ;;  %v2398_v33 = vadd.f32 %v3962_v4, %v1088_v31  ;;  %v1090_v35 = vpop.f32.mrb[37].mxu0 }
 0x1f5   : > { %v2400_v34 = vadd.f32 %v3964_v5, %v1519_v32  ;;  %v1521_v36 = vpop.f32.mrb[37].mxu1  ;;  %v2399_v37 = vadd.f32 %v3966_v6, %v1090_v35 }
 0x1f6   : > { %2590 = vst [vmem:[%s3974_s28 + $0x1b0] sm:$0xff] %v2398_v33 }
 0x1f7   : > { %2592 = vst [vmem:[%s3974_s28 + $0x1c0] sm:$0xff] %v2400_v34  ;;  %2591 = vst [vmem:[%s3974_s28 + $0x1b8] sm:$0xff] %v2399_v37  ;;  %v1094_v38 = vpop.f32.mrb[38].mxu0 }
 0x1f8   : > { %v1524_v39 = vpop.f32.mrb[38].mxu1  ;;  %v2401_v40 = vadd.f32 %v3962_v4, %v1094_v38  ;;  %v1096_v42 = vpop.f32.mrb[39].mxu0 }
 0x1f9   : > { %v2403_v41 = vadd.f32 %v3964_v5, %v1524_v39  ;;  %v1526_v43 = vpop.f32.mrb[39].mxu1  ;;  %v2402_v44 = vadd.f32 %v3966_v6, %v1096_v42 }
 0x1fa   : > { %2593 = vst [vmem:[%s3974_s28 + $0x1c8] sm:$0xff] %v2401_v40 }
 0x1fb   : > { %2595 = vst [vmem:[%s3974_s28 + $0x1d8] sm:$0xff] %v2403_v41  ;;  %2594 = vst [vmem:[%s3974_s28 + $0x1d0] sm:$0xff] %v2402_v44  ;;  %v1100_v45 = vpop.f32.mrb[40].mxu0 }
 0x1fc   : > { %v1529_v46 = vpop.f32.mrb[40].mxu1  ;;  %v2404_v47 = vadd.f32 %v3962_v4, %v1100_v45  ;;  %v1102_v49 = vpop.f32.mrb[41].mxu0 }
 0x1fd   : > { %v2406_v48 = vadd.f32 %v3964_v5, %v1529_v46  ;;  %v1531_v50 = vpop.f32.mrb[41].mxu1  ;;  %v2405_v51 = vadd.f32 %v3966_v6, %v1102_v49 }
 0x1fe   : > { %2596 = vst [vmem:[%s3974_s28 + $0x1e0] sm:$0xff] %v2404_v47 }
 0x1ff   : > { %2598 = vst [vmem:[%s3974_s28 + $0x1f0] sm:$0xff] %v2406_v48  ;;  %2597 = vst [vmem:[%s3974_s28 + $0x1e8] sm:$0xff] %v2405_v51  ;;  %v1106_v52 = vpop.f32.mrb[42].mxu0 }
 0x200   : > { %v1534_v53 = vpop.f32.mrb[42].mxu1  ;;  %v2407_v54 = vadd.f32 %v3962_v4, %v1106_v52  ;;  %v1108_v56 = vpop.f32.mrb[43].mxu0 }
 0x201   : > { %v2409_v55 = vadd.f32 %v3964_v5, %v1534_v53  ;;  %v1536_v57 = vpop.f32.mrb[43].mxu1  ;;  %v2408_v58 = vadd.f32 %v3966_v6, %v1108_v56 }
 0x202   : > { %2599 = vst [vmem:[%s3974_s28 + $0x1f8] sm:$0xff] %v2407_v54 }
 0x203   : > { %2601 = vst [vmem:[%s3974_s28 + $0x208] sm:$0xff] %v2409_v55  ;;  %2600 = vst [vmem:[%s3974_s28 + $0x200] sm:$0xff] %v2408_v58  ;;  %v1112_v59 = vpop.f32.mrb[44].mxu0 }
 0x204   : > { %v1539_v60 = vpop.f32.mrb[44].mxu1  ;;  %v2410_v61 = vadd.f32 %v3962_v4, %v1112_v59  ;;  %v1114_v63 = vpop.f32.mrb[45].mxu0 }
 0x205   : > { %v2412_v62 = vadd.f32 %v3964_v5, %v1539_v60  ;;  %v1541_v1 = vpop.f32.mrb[45].mxu1  ;;  %v2411_v2 = vadd.f32 %v3966_v6, %v1114_v63 }
 0x206   : > { %2602 = vst [vmem:[%s3974_s28 + $0x210] sm:$0xff] %v2410_v61 }
 0x207   : > { %2604 = vst [vmem:[%s3974_s28 + $0x220] sm:$0xff] %v2412_v62  ;;  %2603 = vst [vmem:[%s3974_s28 + $0x218] sm:$0xff] %v2411_v2  ;;  %v1118_v3 = vpop.f32.mrb[46].mxu0 }
 0x208   : > { %v1544_v7 = vpop.f32.mrb[46].mxu1  ;;  %v2413_v8 = vadd.f32 %v3962_v4, %v1118_v3  ;;  %v1120_v10 = vpop.f32.mrb[47].mxu0 }
 0x209   : > { %v2415_v9 = vadd.f32 %v3964_v5, %v1544_v7  ;;  %v1546_v11 = vpop.f32.mrb[47].mxu1  ;;  %v2414_v12 = vadd.f32 %v3966_v6, %v1120_v10 }
 0x20a   : > { %2605 = vst [vmem:[%s3974_s28 + $0x228] sm:$0xff] %v2413_v8 }
 0x20b   : > { %2607 = vst [vmem:[%s3974_s28 + $0x238] sm:$0xff] %v2415_v9  ;;  %2606 = vst [vmem:[%s3974_s28 + $0x230] sm:$0xff] %v2414_v12  ;;  %v1124_v13 = vpop.f32.mrb[48].mxu0 }
 0x20c   : > { %v1549_v14 = vpop.f32.mrb[48].mxu1  ;;  %v2416_v15 = vadd.f32 %v3962_v4, %v1124_v13  ;;  %v1126_v17 = vpop.f32.mrb[49].mxu0 }
 0x20d   : > { %v2418_v16 = vadd.f32 %v3964_v5, %v1549_v14  ;;  %v1551_v18 = vpop.f32.mrb[49].mxu1  ;;  %v2417_v19 = vadd.f32 %v3966_v6, %v1126_v17 }
 0x20e   : > { %2608 = vst [vmem:[%s3974_s28 + $0x240] sm:$0xff] %v2416_v15 }
 0x20f   : > { %2610 = vst [vmem:[%s3974_s28 + $0x250] sm:$0xff] %v2418_v16  ;;  %2609 = vst [vmem:[%s3974_s28 + $0x248] sm:$0xff] %v2417_v19  ;;  %v1130_v20 = vpop.f32.mrb[50].mxu0 }
 0x210   : > { %v1554_v21 = vpop.f32.mrb[50].mxu1  ;;  %v2419_v22 = vadd.f32 %v3962_v4, %v1130_v20  ;;  %v1132_v0 = vpop.f32.mrb[51].mxu0 }
 0x211   : > { %v2421_v23 = vadd.f32 %v3964_v5, %v1554_v21  ;;  %v1556_v24 = vpop.f32.mrb[51].mxu1  ;;  %v2420_v25 = vadd.f32 %v3966_v6, %v1132_v0 }
 0x212   : > { %2611 = vst [vmem:[%s3974_s28 + $0x258] sm:$0xff] %v2419_v22 }
 0x213   : > { %2613 = vst [vmem:[%s3974_s28 + $0x268] sm:$0xff] %v2421_v23  ;;  %2612 = vst [vmem:[%s3974_s28 + $0x260] sm:$0xff] %v2420_v25  ;;  %v1136_v26 = vpop.f32.mrb[52].mxu0 }
 0x214   : > { %v1559_v27 = vpop.f32.mrb[52].mxu1  ;;  %v2422_v28 = vadd.f32 %v3962_v4, %v1136_v26  ;;  %v1138_v30 = vpop.f32.mrb[53].mxu0 }
 0x215   : > { %v2424_v29 = vadd.f32 %v3964_v5, %v1559_v27  ;;  %v1561_v31 = vpop.f32.mrb[53].mxu1  ;;  %v2423_v32 = vadd.f32 %v3966_v6, %v1138_v30 }
 0x216   : > { %2614 = vst [vmem:[%s3974_s28 + $0x270] sm:$0xff] %v2422_v28 }
 0x217   : > { %2616 = vst [vmem:[%s3974_s28 + $0x280] sm:$0xff] %v2424_v29  ;;  %2615 = vst [vmem:[%s3974_s28 + $0x278] sm:$0xff] %v2423_v32  ;;  %v1142_v33 = vpop.f32.mrb[54].mxu0 }
 0x218   : > { %v1564_v34 = vpop.f32.mrb[54].mxu1  ;;  %v2425_v35 = vadd.f32 %v3962_v4, %v1142_v33  ;;  %v1144_v37 = vpop.f32.mrb[55].mxu0 }
 0x219   : > { %v2427_v36 = vadd.f32 %v3964_v5, %v1564_v34  ;;  %v1566_v38 = vpop.f32.mrb[55].mxu1  ;;  %v2426_v39 = vadd.f32 %v3966_v6, %v1144_v37 }
 0x21a   : > { %2617 = vst [vmem:[%s3974_s28 + $0x288] sm:$0xff] %v2425_v35 }
 0x21b   : > { %2619 = vst [vmem:[%s3974_s28 + $0x298] sm:$0xff] %v2427_v36  ;;  %2618 = vst [vmem:[%s3974_s28 + $0x290] sm:$0xff] %v2426_v39  ;;  %v1148_v40 = vpop.f32.mrb[56].mxu0 }
 0x21c   : > { %v1569_v41 = vpop.f32.mrb[56].mxu1  ;;  %v2428_v42 = vadd.f32 %v3962_v4, %v1148_v40  ;;  %v1150_v44 = vpop.f32.mrb[57].mxu0 }
 0x21d   : > { %v2430_v43 = vadd.f32 %v3964_v5, %v1569_v41  ;;  %v1571_v45 = vpop.f32.mrb[57].mxu1  ;;  %v2429_v46 = vadd.f32 %v3966_v6, %v1150_v44 }
 0x21e   : > { %2620 = vst [vmem:[%s3974_s28 + $0x2a0] sm:$0xff] %v2428_v42 }
 0x21f   : > { %2622 = vst [vmem:[%s3974_s28 + $0x2b0] sm:$0xff] %v2430_v43  ;;  %2621 = vst [vmem:[%s3974_s28 + $0x2a8] sm:$0xff] %v2429_v46  ;;  %v1154_v47 = vpop.f32.mrb[58].mxu0 }
 0x220   : > { %v1574_v48 = vpop.f32.mrb[58].mxu1  ;;  %v2431_v49 = vadd.f32 %v3962_v4, %v1154_v47  ;;  %v1156_v51 = vpop.f32.mrb[59].mxu0 }
 0x221   : > { %v2433_v50 = vadd.f32 %v3964_v5, %v1574_v48  ;;  %v1576_v52 = vpop.f32.mrb[59].mxu1  ;;  %v2432_v53 = vadd.f32 %v3966_v6, %v1156_v51 }
 0x222   : > { %2623 = vst [vmem:[%s3974_s28 + $0x2b8] sm:$0xff] %v2431_v49 }
 0x223   : > { %2625 = vst [vmem:[%s3974_s28 + $0x2c8] sm:$0xff] %v2433_v50  ;;  %2624 = vst [vmem:[%s3974_s28 + $0x2c0] sm:$0xff] %v2432_v53  ;;  %v1160_v54 = vpop.f32.mrb[60].mxu0 }
 0x224   : > { %v1579_v55 = vpop.f32.mrb[60].mxu1  ;;  %v2434_v56 = vadd.f32 %v3962_v4, %v1160_v54  ;;  %v1162_v58 = vpop.f32.mrb[61].mxu0 }
 0x225   : > { %v2436_v57 = vadd.f32 %v3964_v5, %v1579_v55  ;;  %v1581_v59 = vpop.f32.mrb[61].mxu1  ;;  %v2435_v60 = vadd.f32 %v3966_v6, %v1162_v58 }
 0x226   : > { %2626 = vst [vmem:[%s3974_s28 + $0x2d0] sm:$0xff] %v2434_v56 }
 0x227   : > { %2628 = vst [vmem:[%s3974_s28 + $0x2e0] sm:$0xff] %v2436_v57  ;;  %2627 = vst [vmem:[%s3974_s28 + $0x2d8] sm:$0xff] %v2435_v60  ;;  %v1166_v61 = vpop.f32.mrb[62].mxu0 }
 0x228   : > { %v1584_v62 = vpop.f32.mrb[62].mxu1  ;;  %v2437_v63 = vadd.f32 %v3962_v4, %v1166_v61  ;;  %v1168_v2 = vpop.f32.mrb[63].mxu0 }
 0x229   : > { %v2439_v1 = vadd.f32 %v3964_v5, %v1584_v62  ;;  %v1586_v3 = vpop.f32.mrb[63].mxu1  ;;  %v2438_v7 = vadd.f32 %v3966_v6, %v1168_v2 }
 0x22a   : > { %2629 = vst [vmem:[%s3974_s28 + $0x2e8] sm:$0xff] %v2437_v63 }
 0x22b   : > { %2631 = vst [vmem:[%s3974_s28 + $0x2f8] sm:$0xff] %v2439_v1  ;;  %2630 = vst [vmem:[%s3974_s28 + $0x2f0] sm:$0xff] %v2438_v7  ;;  %v1172_v8 = vpop.f32.mrb[64].mxu0 }
 0x22c   : > { %v1589_v9 = vpop.f32.mrb[64].mxu1  ;;  %v2440_v10 = vadd.f32 %v3962_v4, %v1172_v8  ;;  %v1174_v12 = vpop.f32.mrb[65].mxu0 }
 0x22d   : > { %v2442_v11 = vadd.f32 %v3964_v5, %v1589_v9  ;;  %v1591_v13 = vpop.f32.mrb[65].mxu1  ;;  %v2441_v14 = vadd.f32 %v3966_v6, %v1174_v12 }
 0x22e   : > { %2632 = vst [vmem:[%s3974_s28 + $0x300] sm:$0xff] %v2440_v10 }
 0x22f   : > { %2634 = vst [vmem:[%s3974_s28 + $0x310] sm:$0xff] %v2442_v11  ;;  %2633 = vst [vmem:[%s3974_s28 + $0x308] sm:$0xff] %v2441_v14  ;;  %v1178_v15 = vpop.f32.mrb[66].mxu0 }
 0x230   : > { %v1594_v16 = vpop.f32.mrb[66].mxu1  ;;  %v2443_v17 = vadd.f32 %v3962_v4, %v1178_v15  ;;  %v1180_v19 = vpop.f32.mrb[67].mxu0 }
 0x231   : > { %v2445_v18 = vadd.f32 %v3964_v5, %v1594_v16  ;;  %v1596_v20 = vpop.f32.mrb[67].mxu1  ;;  %v2444_v21 = vadd.f32 %v3966_v6, %v1180_v19 }
 0x232   : > { %2635 = vst [vmem:[%s3974_s28 + $0x318] sm:$0xff] %v2443_v17 }
 0x233   : > { %2637 = vst [vmem:[%s3974_s28 + $0x328] sm:$0xff] %v2445_v18  ;;  %2636 = vst [vmem:[%s3974_s28 + $0x320] sm:$0xff] %v2444_v21  ;;  %v1184_v22 = vpop.f32.mrb[68].mxu0 }
 0x234   : > { %v1599_v23 = vpop.f32.mrb[68].mxu1  ;;  %v2446_v0 = vadd.f32 %v3962_v4, %v1184_v22  ;;  %v1186_v25 = vpop.f32.mrb[69].mxu0 }
 0x235   : > { %v2448_v24 = vadd.f32 %v3964_v5, %v1599_v23  ;;  %v1601_v26 = vpop.f32.mrb[69].mxu1  ;;  %v2447_v27 = vadd.f32 %v3966_v6, %v1186_v25 }
 0x236   : > { %2638 = vst [vmem:[%s3974_s28 + $0x330] sm:$0xff] %v2446_v0 }
 0x237   : > { %2640 = vst [vmem:[%s3974_s28 + $0x340] sm:$0xff] %v2448_v24  ;;  %2639 = vst [vmem:[%s3974_s28 + $0x338] sm:$0xff] %v2447_v27  ;;  %v1190_v28 = vpop.f32.mrb[70].mxu0 }
 0x238   : > { %v1604_v29 = vpop.f32.mrb[70].mxu1  ;;  %v2449_v30 = vadd.f32 %v3962_v4, %v1190_v28  ;;  %v1192_v32 = vpop.f32.mrb[71].mxu0 }
 0x239   : > { %v2451_v31 = vadd.f32 %v3964_v5, %v1604_v29  ;;  %v1606_v33 = vpop.f32.mrb[71].mxu1  ;;  %v2450_v34 = vadd.f32 %v3966_v6, %v1192_v32 }
 0x23a   : > { %2641 = vst [vmem:[%s3974_s28 + $0x348] sm:$0xff] %v2449_v30 }
 0x23b   : > { %2643 = vst [vmem:[%s3974_s28 + $0x358] sm:$0xff] %v2451_v31  ;;  %2642 = vst [vmem:[%s3974_s28 + $0x350] sm:$0xff] %v2450_v34  ;;  %v1196_v35 = vpop.f32.mrb[72].mxu0 }
 0x23c   : > { %v1609_v36 = vpop.f32.mrb[72].mxu1  ;;  %v2452_v37 = vadd.f32 %v3962_v4, %v1196_v35  ;;  %v1198_v39 = vpop.f32.mrb[73].mxu0 }
 0x23d   : > { %v2454_v38 = vadd.f32 %v3964_v5, %v1609_v36  ;;  %v1611_v40 = vpop.f32.mrb[73].mxu1  ;;  %v2453_v41 = vadd.f32 %v3966_v6, %v1198_v39 }
 0x23e   : > { %2644 = vst [vmem:[%s3974_s28 + $0x360] sm:$0xff] %v2452_v37 }
 0x23f   : > { %2646 = vst [vmem:[%s3974_s28 + $0x370] sm:$0xff] %v2454_v38  ;;  %2645 = vst [vmem:[%s3974_s28 + $0x368] sm:$0xff] %v2453_v41  ;;  %v1202_v42 = vpop.f32.mrb[74].mxu0 }
 0x240   : > { %v1614_v43 = vpop.f32.mrb[74].mxu1  ;;  %v2455_v44 = vadd.f32 %v3962_v4, %v1202_v42  ;;  %v1204_v46 = vpop.f32.mrb[75].mxu0 }
 0x241   : > { %v2457_v45 = vadd.f32 %v3964_v5, %v1614_v43  ;;  %v1616_v47 = vpop.f32.mrb[75].mxu1  ;;  %v2456_v48 = vadd.f32 %v3966_v6, %v1204_v46 }
 0x242   : > { %2647 = vst [vmem:[%s3974_s28 + $0x378] sm:$0xff] %v2455_v44 }
 0x243   : > { %2649 = vst [vmem:[%s3974_s28 + $0x388] sm:$0xff] %v2457_v45  ;;  %2648 = vst [vmem:[%s3974_s28 + $0x380] sm:$0xff] %v2456_v48  ;;  %v1208_v49 = vpop.f32.mrb[76].mxu0 }
 0x244   : > { %v1619_v50 = vpop.f32.mrb[76].mxu1  ;;  %v2458_v51 = vadd.f32 %v3962_v4, %v1208_v49  ;;  %v1210_v53 = vpop.f32.mrb[77].mxu0 }
 0x245   : > { %v2460_v52 = vadd.f32 %v3964_v5, %v1619_v50  ;;  %v1621_v54 = vpop.f32.mrb[77].mxu1  ;;  %v2459_v55 = vadd.f32 %v3966_v6, %v1210_v53 }
 0x246   : > { %2650 = vst [vmem:[%s3974_s28 + $0x390] sm:$0xff] %v2458_v51 }
 0x247   : > { %2652 = vst [vmem:[%s3974_s28 + $0x3a0] sm:$0xff] %v2460_v52  ;;  %2651 = vst [vmem:[%s3974_s28 + $0x398] sm:$0xff] %v2459_v55  ;;  %v1214_v56 = vpop.f32.mrb[78].mxu0 }
 0x248   : > { %v1624_v57 = vpop.f32.mrb[78].mxu1  ;;  %v2461_v58 = vadd.f32 %v3962_v4, %v1214_v56  ;;  %v1216_v60 = vpop.f32.mrb[79].mxu0 }
 0x249   : > { %v2463_v59 = vadd.f32 %v3964_v5, %v1624_v57  ;;  %v1626_v61 = vpop.f32.mrb[79].mxu1  ;;  %v2462_v62 = vadd.f32 %v3966_v6, %v1216_v60 }
 0x24a   : > { %2653 = vst [vmem:[%s3974_s28 + $0x3a8] sm:$0xff] %v2461_v58 }
 0x24b   : > { %2655 = vst [vmem:[%s3974_s28 + $0x3b8] sm:$0xff] %v2463_v59  ;;  %2654 = vst [vmem:[%s3974_s28 + $0x3b0] sm:$0xff] %v2462_v62  ;;  %v1220_v63 = vpop.f32.mrb[80].mxu0 }
 0x24c   : > { %v1629_v1 = vpop.f32.mrb[80].mxu1  ;;  %v2464_v2 = vadd.f32 %v3962_v4, %v1220_v63  ;;  %v1222_v7 = vpop.f32.mrb[81].mxu0 }
 0x24d   : > { %v2466_v3 = vadd.f32 %v3964_v5, %v1629_v1  ;;  %v1631_v8 = vpop.f32.mrb[81].mxu1  ;;  %v2465_v9 = vadd.f32 %v3966_v6, %v1222_v7 }
 0x24e   : > { %2656 = vst [vmem:[%s3974_s28 + $0x3c0] sm:$0xff] %v2464_v2 }
 0x24f   : > { %2658 = vst [vmem:[%s3974_s28 + $0x3d0] sm:$0xff] %v2466_v3  ;;  %2657 = vst [vmem:[%s3974_s28 + $0x3c8] sm:$0xff] %v2465_v9  ;;  %v1226_v10 = vpop.f32.mrb[82].mxu0 }
 0x250   : > { %v1634_v11 = vpop.f32.mrb[82].mxu1  ;;  %v2467_v12 = vadd.f32 %v3962_v4, %v1226_v10  ;;  %v1228_v14 = vpop.f32.mrb[83].mxu0 }
 0x251   : > { %v2469_v13 = vadd.f32 %v3964_v5, %v1634_v11  ;;  %v1636_v15 = vpop.f32.mrb[83].mxu1  ;;  %v2468_v16 = vadd.f32 %v3966_v6, %v1228_v14 }
 0x252   : > { %2659 = vst [vmem:[%s3974_s28 + $0x3d8] sm:$0xff] %v2467_v12 }
 0x253   : > { %2661 = vst [vmem:[%s3974_s28 + $0x3e8] sm:$0xff] %v2469_v13  ;;  %2660 = vst [vmem:[%s3974_s28 + $0x3e0] sm:$0xff] %v2468_v16  ;;  %v1232_v17 = vpop.f32.mrb[84].mxu0 }
 0x254   : > { %v1639_v18 = vpop.f32.mrb[84].mxu1  ;;  %v2470_v19 = vadd.f32 %v3962_v4, %v1232_v17  ;;  %v1234_v21 = vpop.f32.mrb[85].mxu0 }
 0x255   : > { %v2472_v20 = vadd.f32 %v3964_v5, %v1639_v18  ;;  %v1641_v22 = vpop.f32.mrb[85].mxu1  ;;  %v2471_v23 = vadd.f32 %v3966_v6, %v1234_v21 }
 0x256   : > { %2662 = vst [vmem:[%s3974_s28 + $0x3f0] sm:$0xff] %v2470_v19 }
 0x257   : > { %2664 = vst [vmem:[%s3974_s28 + $0x400] sm:$0xff] %v2472_v20  ;;  %2663 = vst [vmem:[%s3974_s28 + $0x3f8] sm:$0xff] %v2471_v23  ;;  %v1238_v0 = vpop.f32.mrb[86].mxu0 }
 0x258   : > { %v1644_v24 = vpop.f32.mrb[86].mxu1  ;;  %v2473_v25 = vadd.f32 %v3962_v4, %v1238_v0  ;;  %v1240_v27 = vpop.f32.mrb[87].mxu0 }
 0x259   : > { %v2475_v26 = vadd.f32 %v3964_v5, %v1644_v24  ;;  %v1646_v28 = vpop.f32.mrb[87].mxu1  ;;  %v2474_v29 = vadd.f32 %v3966_v6, %v1240_v27 }
 0x25a   : > { %2665 = vst [vmem:[%s3974_s28 + $0x408] sm:$0xff] %v2473_v25 }
 0x25b   : > { %2667 = vst [vmem:[%s3974_s28 + $0x418] sm:$0xff] %v2475_v26  ;;  %2666 = vst [vmem:[%s3974_s28 + $0x410] sm:$0xff] %v2474_v29  ;;  %v1244_v30 = vpop.f32.mrb[88].mxu0 }
 0x25c   : > { %v1649_v31 = vpop.f32.mrb[88].mxu1  ;;  %v2476_v32 = vadd.f32 %v3962_v4, %v1244_v30  ;;  %v1246_v34 = vpop.f32.mrb[89].mxu0 }
 0x25d   : > { %v2478_v33 = vadd.f32 %v3964_v5, %v1649_v31  ;;  %v1651_v35 = vpop.f32.mrb[89].mxu1  ;;  %v2477_v36 = vadd.f32 %v3966_v6, %v1246_v34 }
 0x25e   : > { %2668 = vst [vmem:[%s3974_s28 + $0x420] sm:$0xff] %v2476_v32 }
 0x25f   : > { %2670 = vst [vmem:[%s3974_s28 + $0x430] sm:$0xff] %v2478_v33  ;;  %2669 = vst [vmem:[%s3974_s28 + $0x428] sm:$0xff] %v2477_v36  ;;  %v1250_v37 = vpop.f32.mrb[90].mxu0 }
 0x260   : > { %v1654_v38 = vpop.f32.mrb[90].mxu1  ;;  %v2479_v39 = vadd.f32 %v3962_v4, %v1250_v37  ;;  %v1252_v41 = vpop.f32.mrb[91].mxu0 }
 0x261   : > { %v2481_v40 = vadd.f32 %v3964_v5, %v1654_v38  ;;  %v1656_v42 = vpop.f32.mrb[91].mxu1  ;;  %v2480_v43 = vadd.f32 %v3966_v6, %v1252_v41 }
 0x262   : > { %2671 = vst [vmem:[%s3974_s28 + $0x438] sm:$0xff] %v2479_v39 }
 0x263   : > { %2673 = vst [vmem:[%s3974_s28 + $0x448] sm:$0xff] %v2481_v40  ;;  %2672 = vst [vmem:[%s3974_s28 + $0x440] sm:$0xff] %v2480_v43  ;;  %v1256_v44 = vpop.f32.mrb[92].mxu0 }
 0x264   : > { %v1659_v45 = vpop.f32.mrb[92].mxu1  ;;  %v2482_v46 = vadd.f32 %v3962_v4, %v1256_v44  ;;  %v1258_v48 = vpop.f32.mrb[93].mxu0 }
 0x265   : > { %v2484_v47 = vadd.f32 %v3964_v5, %v1659_v45  ;;  %v1661_v49 = vpop.f32.mrb[93].mxu1  ;;  %v2483_v50 = vadd.f32 %v3966_v6, %v1258_v48 }
 0x266   : > { %2674 = vst [vmem:[%s3974_s28 + $0x450] sm:$0xff] %v2482_v46 }
 0x267   : > { %2676 = vst [vmem:[%s3974_s28 + $0x460] sm:$0xff] %v2484_v47  ;;  %2675 = vst [vmem:[%s3974_s28 + $0x458] sm:$0xff] %v2483_v50  ;;  %v1262_v51 = vpop.f32.mrb[94].mxu0 }
 0x268   : > { %v1664_v52 = vpop.f32.mrb[94].mxu1  ;;  %v2485_v53 = vadd.f32 %v3962_v4, %v1262_v51  ;;  %v1264_v55 = vpop.f32.mrb[95].mxu0 }
 0x269   : > { %v2487_v54 = vadd.f32 %v3964_v5, %v1664_v52  ;;  %v1666_v56 = vpop.f32.mrb[95].mxu1  ;;  %v2486_v57 = vadd.f32 %v3966_v6, %v1264_v55 }
 0x26a   : > { %2677 = vst [vmem:[%s3974_s28 + $0x468] sm:$0xff] %v2485_v53 }
 0x26b   : > { %2679 = vst [vmem:[%s3974_s28 + $0x478] sm:$0xff] %v2487_v54  ;;  %2678 = vst [vmem:[%s3974_s28 + $0x470] sm:$0xff] %v2486_v57  ;;  %v1268_v58 = vpop.f32.mrb[96].mxu0 }
 0x26c   : > { %v1669_v59 = vpop.f32.mrb[96].mxu1  ;;  %v2488_v60 = vadd.f32 %v3962_v4, %v1268_v58  ;;  %v1270_v62 = vpop.f32.mrb[97].mxu0 }
 0x26d   : > { %v2490_v61 = vadd.f32 %v3964_v5, %v1669_v59  ;;  %v1671_v63 = vpop.f32.mrb[97].mxu1  ;;  %v2489_v1 = vadd.f32 %v3966_v6, %v1270_v62 }
 0x26e   : > { %2680 = vst [vmem:[%s3974_s28 + $0x480] sm:$0xff] %v2488_v60 }
 0x26f   : > { %2682 = vst [vmem:[%s3974_s28 + $0x490] sm:$0xff] %v2490_v61  ;;  %2681 = vst [vmem:[%s3974_s28 + $0x488] sm:$0xff] %v2489_v1  ;;  %v1274_v2 = vpop.f32.mrb[98].mxu0 }
 0x270   : > { %v1674_v3 = vpop.f32.mrb[98].mxu1  ;;  %v2491_v7 = vadd.f32 %v3962_v4, %v1274_v2  ;;  %v1276_v9 = vpop.f32.mrb[99].mxu0 }
 0x271   : > { %v2493_v8 = vadd.f32 %v3964_v5, %v1674_v3  ;;  %v1676_v10 = vpop.f32.mrb[99].mxu1  ;;  %v2492_v11 = vadd.f32 %v3966_v6, %v1276_v9 }
 0x272   : > { %2683 = vst [vmem:[%s3974_s28 + $0x498] sm:$0xff] %v2491_v7 }
 0x273   : > { %2685 = vst [vmem:[%s3974_s28 + $0x4a8] sm:$0xff] %v2493_v8  ;;  %2684 = vst [vmem:[%s3974_s28 + $0x4a0] sm:$0xff] %v2492_v11  ;;  %v1280_v12 = vpop.f32.mrb[100].mxu0 }
 0x274   : > { %v1679_v13 = vpop.f32.mrb[100].mxu1  ;;  %v2494_v14 = vadd.f32 %v3962_v4, %v1280_v12  ;;  %v1282_v16 = vpop.f32.mrb[101].mxu0 }
 0x275   : > { %v2496_v15 = vadd.f32 %v3964_v5, %v1679_v13  ;;  %v1681_v17 = vpop.f32.mrb[101].mxu1  ;;  %v2495_v18 = vadd.f32 %v3966_v6, %v1282_v16 }
 0x276   : > { %2686 = vst [vmem:[%s3974_s28 + $0x4b0] sm:$0xff] %v2494_v14 }
 0x277   : > { %2688 = vst [vmem:[%s3974_s28 + $0x4c0] sm:$0xff] %v2496_v15  ;;  %2687 = vst [vmem:[%s3974_s28 + $0x4b8] sm:$0xff] %v2495_v18  ;;  %v1286_v19 = vpop.f32.mrb[102].mxu0 }
 0x278   : > { %v1684_v20 = vpop.f32.mrb[102].mxu1  ;;  %v2497_v21 = vadd.f32 %v3962_v4, %v1286_v19  ;;  %v1288_v23 = vpop.f32.mrb[103].mxu0 }
 0x279   : > { %v2499_v22 = vadd.f32 %v3964_v5, %v1684_v20  ;;  %v1686_v0 = vpop.f32.mrb[103].mxu1  ;;  %v2498_v24 = vadd.f32 %v3966_v6, %v1288_v23 }
 0x27a   : > { %2689 = vst [vmem:[%s3974_s28 + $0x4c8] sm:$0xff] %v2497_v21 }
 0x27b   : > { %2691 = vst [vmem:[%s3974_s28 + $0x4d8] sm:$0xff] %v2499_v22  ;;  %2690 = vst [vmem:[%s3974_s28 + $0x4d0] sm:$0xff] %v2498_v24  ;;  %v1292_v25 = vpop.f32.mrb[104].mxu0 }
 0x27c   : > { %v1689_v26 = vpop.f32.mrb[104].mxu1  ;;  %v2500_v27 = vadd.f32 %v3962_v4, %v1292_v25  ;;  %v1294_v29 = vpop.f32.mrb[105].mxu0 }
 0x27d   : > { %v2502_v28 = vadd.f32 %v3964_v5, %v1689_v26  ;;  %v1691_v30 = vpop.f32.mrb[105].mxu1  ;;  %v2501_v31 = vadd.f32 %v3966_v6, %v1294_v29 }
 0x27e   : > { %2692 = vst [vmem:[%s3974_s28 + $0x4e0] sm:$0xff] %v2500_v27 }
 0x27f   : > { %2694 = vst [vmem:[%s3974_s28 + $0x4f0] sm:$0xff] %v2502_v28  ;;  %2693 = vst [vmem:[%s3974_s28 + $0x4e8] sm:$0xff] %v2501_v31  ;;  %v1298_v32 = vpop.f32.mrb[106].mxu0 }
 0x280   : > { %v1694_v33 = vpop.f32.mrb[106].mxu1  ;;  %v2503_v34 = vadd.f32 %v3962_v4, %v1298_v32  ;;  %v1300_v36 = vpop.f32.mrb[107].mxu0 }
 0x281   : > { %v2505_v35 = vadd.f32 %v3964_v5, %v1694_v33  ;;  %v1696_v37 = vpop.f32.mrb[107].mxu1  ;;  %v2504_v38 = vadd.f32 %v3966_v6, %v1300_v36 }
 0x282   : > { %2695 = vst [vmem:[%s3974_s28 + $0x4f8] sm:$0xff] %v2503_v34 }
 0x283   : > { %2697 = vst [vmem:[%s3974_s28 + $0x508] sm:$0xff] %v2505_v35  ;;  %2696 = vst [vmem:[%s3974_s28 + $0x500] sm:$0xff] %v2504_v38  ;;  %v1304_v39 = vpop.f32.mrb[108].mxu0 }
 0x284   : > { %v1699_v40 = vpop.f32.mrb[108].mxu1  ;;  %v2506_v41 = vadd.f32 %v3962_v4, %v1304_v39  ;;  %v1306_v43 = vpop.f32.mrb[109].mxu0 }
 0x285   : > { %v2508_v42 = vadd.f32 %v3964_v5, %v1699_v40  ;;  %v1701_v44 = vpop.f32.mrb[109].mxu1  ;;  %v2507_v45 = vadd.f32 %v3966_v6, %v1306_v43 }
 0x286   : > { %2698 = vst [vmem:[%s3974_s28 + $0x510] sm:$0xff] %v2506_v41 }
 0x287   : > { %2700 = vst [vmem:[%s3974_s28 + $0x520] sm:$0xff] %v2508_v42  ;;  %2699 = vst [vmem:[%s3974_s28 + $0x518] sm:$0xff] %v2507_v45  ;;  %v1310_v46 = vpop.f32.mrb[110].mxu0 }
 0x288   : > { %v1704_v47 = vpop.f32.mrb[110].mxu1  ;;  %v2509_v48 = vadd.f32 %v3962_v4, %v1310_v46  ;;  %v1312_v50 = vpop.f32.mrb[111].mxu0 }
 0x289   : > { %v2511_v49 = vadd.f32 %v3964_v5, %v1704_v47  ;;  %v1706_v51 = vpop.f32.mrb[111].mxu1  ;;  %v2510_v52 = vadd.f32 %v3966_v6, %v1312_v50 }
 0x28a   : > { %2701 = vst [vmem:[%s3974_s28 + $0x528] sm:$0xff] %v2509_v48 }
 0x28b   : > { %2703 = vst [vmem:[%s3974_s28 + $0x538] sm:$0xff] %v2511_v49  ;;  %2702 = vst [vmem:[%s3974_s28 + $0x530] sm:$0xff] %v2510_v52  ;;  %v1316_v53 = vpop.f32.mrb[112].mxu0 }
 0x28c   : > { %v1709_v54 = vpop.f32.mrb[112].mxu1  ;;  %v2512_v55 = vadd.f32 %v3962_v4, %v1316_v53  ;;  %v1318_v57 = vpop.f32.mrb[113].mxu0 }
 0x28d   : > { %v2514_v56 = vadd.f32 %v3964_v5, %v1709_v54  ;;  %v1711_v58 = vpop.f32.mrb[113].mxu1  ;;  %v2513_v59 = vadd.f32 %v3966_v6, %v1318_v57 }
 0x28e   : > { %2704 = vst [vmem:[%s3974_s28 + $0x540] sm:$0xff] %v2512_v55 }
 0x28f   : > { %2706 = vst [vmem:[%s3974_s28 + $0x550] sm:$0xff] %v2514_v56  ;;  %2705 = vst [vmem:[%s3974_s28 + $0x548] sm:$0xff] %v2513_v59  ;;  %v1322_v60 = vpop.f32.mrb[114].mxu0 }
 0x290   : > { %v1714_v61 = vpop.f32.mrb[114].mxu1  ;;  %v2515_v62 = vadd.f32 %v3962_v4, %v1322_v60  ;;  %v1324_v1 = vpop.f32.mrb[115].mxu0 }
 0x291   : > { %v2517_v63 = vadd.f32 %v3964_v5, %v1714_v61  ;;  %v1716_v2 = vpop.f32.mrb[115].mxu1  ;;  %v2516_v3 = vadd.f32 %v3966_v6, %v1324_v1 }
 0x292   : > { %2707 = vst [vmem:[%s3974_s28 + $0x558] sm:$0xff] %v2515_v62 }
 0x293   : > { %2709 = vst [vmem:[%s3974_s28 + $0x568] sm:$0xff] %v2517_v63  ;;  %2708 = vst [vmem:[%s3974_s28 + $0x560] sm:$0xff] %v2516_v3  ;;  %v1328_v7 = vpop.f32.mrb[116].mxu0 }
 0x294   : > { %v1719_v8 = vpop.f32.mrb[116].mxu1  ;;  %v2518_v9 = vadd.f32 %v3962_v4, %v1328_v7  ;;  %v1330_v11 = vpop.f32.mrb[117].mxu0 }
 0x295   : > { %v2520_v10 = vadd.f32 %v3964_v5, %v1719_v8  ;;  %v1721_v12 = vpop.f32.mrb[117].mxu1  ;;  %v2519_v13 = vadd.f32 %v3966_v6, %v1330_v11 }
 0x296   : > { %2710 = vst [vmem:[%s3974_s28 + $0x570] sm:$0xff] %v2518_v9 }
 0x297   : > { %2712 = vst [vmem:[%s3974_s28 + $0x580] sm:$0xff] %v2520_v10  ;;  %2711 = vst [vmem:[%s3974_s28 + $0x578] sm:$0xff] %v2519_v13  ;;  %v1334_v14 = vpop.f32.mrb[118].mxu0 }
 0x298   : > { %v1724_v15 = vpop.f32.mrb[118].mxu1  ;;  %v2521_v16 = vadd.f32 %v3962_v4, %v1334_v14  ;;  %v1336_v18 = vpop.f32.mrb[119].mxu0 }
 0x299   : > { %v2523_v17 = vadd.f32 %v3964_v5, %v1724_v15  ;;  %v1726_v19 = vpop.f32.mrb[119].mxu1  ;;  %v2522_v20 = vadd.f32 %v3966_v6, %v1336_v18 }
 0x29a   : > { %2713 = vst [vmem:[%s3974_s28 + $0x588] sm:$0xff] %v2521_v16 }
 0x29b   : > { %2715 = vst [vmem:[%s3974_s28 + $0x598] sm:$0xff] %v2523_v17  ;;  %2714 = vst [vmem:[%s3974_s28 + $0x590] sm:$0xff] %v2522_v20  ;;  %v1340_v21 = vpop.f32.mrb[120].mxu0 }
 0x29c   : > { %v1729_v22 = vpop.f32.mrb[120].mxu1  ;;  %v2524_v23 = vadd.f32 %v3962_v4, %v1340_v21  ;;  %v1342_v24 = vpop.f32.mrb[121].mxu0 }
 0x29d   : > { %v2526_v0 = vadd.f32 %v3964_v5, %v1729_v22  ;;  %v1731_v25 = vpop.f32.mrb[121].mxu1  ;;  %v2525_v26 = vadd.f32 %v3966_v6, %v1342_v24 }
 0x29e   : > { %2716 = vst [vmem:[%s3974_s28 + $0x5a0] sm:$0xff] %v2524_v23 }
 0x29f   : > { %2718 = vst [vmem:[%s3974_s28 + $0x5b0] sm:$0xff] %v2526_v0  ;;  %2717 = vst [vmem:[%s3974_s28 + $0x5a8] sm:$0xff] %v2525_v26  ;;  %v1346_v27 = vpop.f32.mrb[122].mxu0 }
 0x2a0   : > { %v1734_v28 = vpop.f32.mrb[122].mxu1  ;;  %v2527_v29 = vadd.f32 %v3962_v4, %v1346_v27  ;;  %v1348_v31 = vpop.f32.mrb[123].mxu0 }
 0x2a1   : > { %v2529_v30 = vadd.f32 %v3964_v5, %v1734_v28  ;;  %v1736_v32 = vpop.f32.mrb[123].mxu1  ;;  %v2528_v33 = vadd.f32 %v3966_v6, %v1348_v31 }
 0x2a2   : > { %2719 = vst [vmem:[%s3974_s28 + $0x5b8] sm:$0xff] %v2527_v29 }
 0x2a3   : > { %2721 = vst [vmem:[%s3974_s28 + $0x5c8] sm:$0xff] %v2529_v30  ;;  %2720 = vst [vmem:[%s3974_s28 + $0x5c0] sm:$0xff] %v2528_v33  ;;  %v1352_v34 = vpop.f32.mrb[124].mxu0 }
 0x2a4   : > { %v1739_v35 = vpop.f32.mrb[124].mxu1  ;;  %v2530_v36 = vadd.f32 %v3962_v4, %v1352_v34  ;;  %v1354_v38 = vpop.f32.mrb[125].mxu0 }
 0x2a5   : > { %v2532_v37 = vadd.f32 %v3964_v5, %v1739_v35  ;;  %v1741_v39 = vpop.f32.mrb[125].mxu1  ;;  %v2531_v40 = vadd.f32 %v3966_v6, %v1354_v38 }
 0x2a6   : > { %2722 = vst [vmem:[%s3974_s28 + $0x5d0] sm:$0xff] %v2530_v36 }
 0x2a7   : > { %2724 = vst [vmem:[%s3974_s28 + $0x5e0] sm:$0xff] %v2532_v37  ;;  %2723 = vst [vmem:[%s3974_s28 + $0x5d8] sm:$0xff] %v2531_v40  ;;  %v1358_v41 = vpop.f32.mrb[126].mxu0 }
 0x2a8   : > { %v1744_v42 = vpop.f32.mrb[126].mxu1  ;;  %v2533_v43 = vadd.f32 %v3962_v4, %v1358_v41  ;;  %v1360_v45 = vpop.f32.mrb[127].mxu0 }
 0x2a9   : > { %v2535_v44 = vadd.f32 %v3964_v5, %v1744_v42  ;;  %v1746_v46 = vpop.f32.mrb[127].mxu1  ;;  %v2534_v47 = vadd.f32 %v3966_v6, %v1360_v45 }
 0x2aa   : > { %2725 = vst [vmem:[%s3974_s28 + $0x5e8] sm:$0xff] %v2533_v43 }
 0x2ab   : > { %2727 = vst [vmem:[%s3974_s28 + $0x5f8] sm:$0xff] %v2535_v44  ;;  %2726 = vst [vmem:[%s3974_s28 + $0x5f0] sm:$0xff] %v2534_v47 }
 0x2ac   : > { %3271 = shalt.err (!%p3268_p11)
}
 0x2ad   : > { %s3272_s27 = scalar_lea.hbm %s4375_s5, 24576  ;;  %s3276_s28 = scalar_lea.hbm %s4513_s3, 98304 }
 0x2ae   : > { %p3273_p4 = scmp.ne.s32.totalorder %s4375_s5, %s3272_s27  ;;  %p3277_p6 = scmp.lt.u32.totalorder %s4375_s5, %s4513_s3 }
 0x2af   : > { %p3278_p3 = scmp.lt.u32.totalorder %s3276_s28, %s3272_s27  ;;  %p3280_p2 = scmp.lt.u32.totalorder %s3272_s27, %s4375_s5 }
 0x2b0   : > { %p3274_p12 = pnand %p3273_p4, %p4514_p1 }
 0x2b1   : > { %p3279_p5 = por %p3278_p3, %p3277_p6 }
 0x2b2   : > { %p3275_p13 = pneg %p3274_p12 }
 0x2b3   : > { %p3281_p8 = por %p3280_p2, %p3279_p5 }
 0x2b5   : > { %p3282_p10 = pnand %p3281_p8, %p3275_p13 }
 0x2b7   : > { %3285 = shalt.err (!%p3282_p10)
}
 0x2b8   : > { %s3420_s18 = smov 384   ;;  %s3421_s20 = smov 768  }
 0x2b9   : > { %s3422_s15 = smov 24  }
 0x2ba   : > { %3029 = dma.vmem_to_hbm [thread:$0]  (%p4514_p1), %s4379_s30, 24576, %s4375_s5, %s4387_s11, %s3420_s18, %s3421_s20, %s3422_s15  }
 0x2bb PF: > { %p3046_p0 = scmp.ge.s32.totalorder %s3408_s25, 2  ;;  %s2760_s4 = sand.u32 1, %s3356_s12  }
 0x2bc   : > { %p4515_p7 = scmp.ne.s32.totalorder %s4502_s26, 0  ;;  %s2761_s24 = scalar_lea.sflag [#allocation5], %s2760_s4 }
 0x2be   : > { %p3042_p9 = pnand %p3046_p0, %p4515_p7 }
 0x2c0   : > { %3351 = dma.done.wait (!%p3042_p9), %s2761_s24, 24576  }
 0x2c1   : > { %3353 = vsyncadd (!%p3042_p9), %s2761_s24, 4294942720  ;;  %s22_s25 = sadd.s32 1, %s3408_s25   ;;  %s4517_s9 = sld [smem:[#allocation22_spill]] }
 0x2c2   : > { %p4416_p11 = scmp.ge.s32.totalorder %s22_s25, 6   ;;  %s4518_s30 = sld [smem:[#allocation13_spill]] }
 0x2c3   : > { %s4519_s5 = sld [smem:[#allocation20_spill]]  ;;  %s4520_s11 = sld [smem:[#allocation14_spill]] }
 0x2c4   : > { %s4521_s20 = sld [smem:[#allocation21_spill]]  ;;  %s4522_s22 = sld [smem:[#allocation17_spill]] }
 0x2c5   : > { %s4523_s26 = sld [smem:[#allocation18_spill]]  ;;  %s4524_s24 = sld [smem:[#allocation19_spill]] }
 0x2c6   : > { %s4526_s12 = smov %s3360_s13  ;;  %s4527_s13 = smov %s3364_s14 }
 0x2c7   : > { %s4528_s14 = smov %s4517_s9  ;;  %s4529_s15 = smov %s3372_s16 }
 0x2c8   : > { %s4530_s16 = smov %s4518_s30  ;;  %s4532_s18 = smov %s3384_s19 }
 0x2c9   : > { %s4531_s17 = smov %s4519_s5  ;;  %s4533_s19 = smov %s4520_s11 }
 0x2ca   : > { %s4534_s21 = smov %s3400_s23  ;;  %21 = sbr.rel (!%p4416_p11) target bundleno = 15 (0xf), region = 109 }
 0x2cb   : > { %s4535_s23 = smov %s4523_s26 }
 0x2d1   :  { %2766 = vsyncpa [#allocation4], 1 }
 0x2d2   :  { %2768 = vsyncpa [#allocation4 + $0x1], 1 }
 0x2d3   :  { %2769 = vsyncpa [#allocation7], 1 }
 0x2d4   :  { %2771 = vsyncpa [#allocation7 + $0x1], 1 }
 0x2d5   :  { %2772 = vsyncpa [#allocation5], 1 }
 0x2d6   :  { %2774 = vsyncpa [#allocation5 + $0x1], 1 }

</bundles_post_ra>
